<compile_context>
chip_gen: v7x
topology: tpu7x:2x2x1
jax: 0.10.0
libtpu: 0.0.40
codegen_flags: <defaults>
</compile_context>

<pallas_src>
import jax
import jax.numpy as jnp
from jax.experimental import pallas as pl
from jax.experimental.pallas import tpu as pltpu

IN_FEATURES = 28 * 28          # 784 (multiple of 16 -> clean bf16 sublane packing for w1)
HIDDEN = 512
OUT_FEATURES = 10
OUT_PAD = 128                  # 10 padded to one full lane group (zero-filled)

TM_CAP = 512                   # batch-tile cap; safe for v5e's scoped VMEM, big enough
                               # that per-grid-step overhead is negligible on v6e/v7x.


def mlp_kernel(x_ref, w1_ref, b1_ref, w2_ref, b2_ref, w3_ref, b3_ref, o_ref):
    # x_ref: (tm, 784) f32      w1: (784, 512) bf16   b1: (1, 512) f32
    # w2:    (512, 512) bf16    b2: (1, 512) f32
    # w3:    (512, 128) bf16    b3: (1, 128) f32      o_ref: (tm, 128) bf16
    x = x_ref[...].astype(jnp.bfloat16)   # cast in-kernel: avoids a wrapper HBM pass

    # MXU matmuls on bf16 inputs, f32 accumulation; bias/ReLU in f32 on the VPU.
    h1 = jnp.dot(x, w1_ref[...], preferred_element_type=jnp.float32) + b1_ref[...]
    h1 = jnp.maximum(h1, 0.0)

    h2 = jnp.dot(h1.astype(jnp.bfloat16), w2_ref[...],
                 preferred_element_type=jnp.float32) + b2_ref[...]
    h2 = jnp.maximum(h2, 0.0)

    logits = jnp.dot(h2.astype(jnp.bfloat16), w3_ref[...],
                     preferred_element_type=jnp.float32) + b3_ref[...]
    o_ref[...] = logits.astype(o_ref.dtype)   # lane-dense bf16 store


def _round_up(n, m):
    return (n + m - 1) // m * m


def _choose_tm(B):
    """Batch-tile size: multiple of 16 (bf16 sublane pack), capped at TM_CAP, and
    arranged so B > 16 gives at least two grid steps (v7x has 2 TensorCores)."""
    if B <= 16:
        return _round_up(B, 16)
    half = _round_up(-(-B // 2), 16)
    return min(TM_CAP, half)


def neural_network_forward(x, w1, b1, w2, b2, w3, b3):
    """x: (B, 28, 28) float32 -> logits (B, 10) float32."""
    B = x.shape[0]
    tm = _choose_tm(B)
    B_pad = _round_up(B, tm)
    grid = (B_pad // tm,)

    # --- input / weight prep ---
    x_flat = x.reshape(B, IN_FEATURES)                              # nn.Flatten()
    # Only the batch dim is (possibly) zero-padded; feature dim stays 784 and f32.
    x_pad = jnp.pad(x_flat, ((0, B_pad - B), (0, 0)))

    w1_b = w1.astype(jnp.bfloat16)
    w2_b = w2.astype(jnp.bfloat16)
    w3_p = jnp.pad(w3, ((0, 0), (0, OUT_PAD - OUT_FEATURES))).astype(jnp.bfloat16)

    b1_2d = b1.reshape(1, HIDDEN).astype(jnp.float32)
    b2_2d = b2.reshape(1, HIDDEN).astype(jnp.float32)
    b3_2d = jnp.pad(b3, (0, OUT_PAD - OUT_FEATURES)).reshape(1, OUT_PAD).astype(jnp.float32)

    flops = 2 * B_pad * (IN_FEATURES * HIDDEN + HIDDEN * HIDDEN + HIDDEN * OUT_PAD)
    bytes_accessed = (
        x_pad.size * 4
        + (w1_b.size + w2_b.size + w3_p.size) * 2
        + (b1_2d.size + b2_2d.size + b3_2d.size) * 4
        + B_pad * OUT_PAD * 2
    )

    out = pl.pallas_call(
        mlp_kernel,
        out_shape=jax.ShapeDtypeStruct((B_pad, OUT_PAD), jnp.bfloat16),
        grid_spec=pltpu.PrefetchScalarGridSpec(
            num_scalar_prefetch=0,
            grid=grid,
            in_specs=[
                pl.BlockSpec((tm, IN_FEATURES), lambda i: (i, 0)),   # x tile per grid step
                pl.BlockSpec((IN_FEATURES, HIDDEN), lambda i: (0, 0)),  # weights VMEM-resident
                pl.BlockSpec((1, HIDDEN), lambda i: (0, 0)),
                pl.BlockSpec((HIDDEN, HIDDEN), lambda i: (0, 0)),
                pl.BlockSpec((1, HIDDEN), lambda i: (0, 0)),
                pl.BlockSpec((HIDDEN, OUT_PAD), lambda i: (0, 0)),
                pl.BlockSpec((1, OUT_PAD), lambda i: (0, 0)),
            ],
            out_specs=pl.BlockSpec((tm, OUT_PAD), lambda i: (i, 0)),
        ),
        compiler_params=pltpu.CompilerParams(
            dimension_semantics=("parallel",),
            vmem_limit_bytes=32 * 1024 * 1024,   # covers tm=512 tiles; > v5e's 16 MiB default
        ),
        cost_estimate=pl.CostEstimate(
            flops=flops, transcendentals=0, bytes_accessed=bytes_accessed),
    )(x_pad, w1_b, b1_2d, w2_b, b2_2d, w3_p, b3_2d)

    return out[:B, :OUT_FEATURES].astype(jnp.float32)


neural_network_forward_jit = jax.jit(neural_network_forward)


def init_params(key):
    """Deterministic init matching nn.Linear shapes (stored transposed: (in, out))."""
    k1, k2, k3, k4, k5, k6 = jax.random.split(key, 6)

    def linear(kw, kb, fan_in, fan_out):
        bound = 1.0 / jnp.sqrt(fan_in)
        w = jax.random.uniform(kw, (fan_in, fan_out), jnp.float32, -bound, bound)
        b = jax.random.uniform(kb, (fan_out,), jnp.float32, -bound, bound)
        return w, b

    w1, b1 = linear(k1, k2, IN_FEATURES, HIDDEN)
    w2, b2 = linear(k3, k4, HIDDEN, HIDDEN)
    w3, b3 = linear(k5, k6, HIDDEN, OUT_FEATURES)
    return w1, b1, w2, b2, w3, b3


if __name__ == "__main__":
    key = jax.random.PRNGKey(0)
    kx, kp = jax.random.split(key)

    B = 2
    x = jax.random.uniform(kx, (B, 28, 28), jnp.float32)   # torch.rand(B, 28, 28)
    params = init_params(kp)

    logits = neural_network_forward_jit(x, *params)
    logits = jax.block_until_ready(logits)
    assert logits.shape == (B, OUT_FEATURES)

    # Reference 1: same bf16-input / f32-accum numerics as the kernel (tight check;
    # the kernel additionally rounds the final logits to bf16).
    w1, b1, w2, b2, w3, b3 = params
    xf = x.reshape(B, -1).astype(jnp.bfloat16)
    r = jnp.dot(xf, w1.astype(jnp.bfloat16), preferred_element_type=jnp.float32) + b1
    r = jnp.maximum(r, 0.0)
    r = jnp.dot(r.astype(jnp.bfloat16), w2.astype(jnp.bfloat16),
                preferred_element_type=jnp.float32) + b2
    r = jnp.maximum(r, 0.0)
    ref_bf16 = jnp.dot(r.astype(jnp.bfloat16), w3.astype(jnp.bfloat16),
                       preferred_element_type=jnp.float32) + b3
    assert jnp.allclose(logits, ref_bf16, atol=2e-2, rtol=2e-2)

    # Reference 2: full f32 PyTorch-equivalent forward (loose check; bf16 weights /
    # activations / output intentionally trade a little precision for HBM traffic).
    xf32 = x.reshape(B, -1)
    ref = jnp.maximum(xf32 @ w1 + b1, 0.0)
    ref = jnp.maximum(ref @ w2 + b2, 0.0)
    ref = ref @ w3 + b3
    assert jnp.allclose(logits, ref, atol=5e-2, rtol=5e-2)

    print("KERNEL_OK")
</pallas_src>

<mosaic_0001>
module attributes {stable_mosaic.version = 11 : i64} {
  func.func @mlp_kernel(%arg0: i32, %arg1: memref<16x784xf32, #tpu.memory_space<vmem>>, %arg2: memref<784x512xbf16, #tpu.memory_space<vmem>>, %arg3: memref<1x512xf32, #tpu.memory_space<vmem>>, %arg4: memref<512x512xbf16, #tpu.memory_space<vmem>>, %arg5: memref<1x512xf32, #tpu.memory_space<vmem>>, %arg6: memref<512x128xbf16, #tpu.memory_space<vmem>>, %arg7: memref<1x128xf32, #tpu.memory_space<vmem>>, %arg8: memref<16x128xbf16, #tpu.memory_space<vmem>>) attributes {dimension_semantics = [#tpu.dimension_semantics<parallel>], iteration_bounds = array<i64: 1>, scalar_prefetch = 0 : i64, scratch_operands = 0 : i64, tpu.core_type = #tpu.core_type<tc>, window_params = [{transform_indices = @transform_0, window_bounds = array<i64: 16, 784>}, {pipeline_mode = #tpu.pipeline_mode<synchronous>, transform_indices = @transform_1, window_bounds = array<i64: 784, 512>}, {pipeline_mode = #tpu.pipeline_mode<synchronous>, transform_indices = @transform_2, window_bounds = array<i64: 1, 512>}, {pipeline_mode = #tpu.pipeline_mode<synchronous>, transform_indices = @transform_3, window_bounds = array<i64: 512, 512>}, {pipeline_mode = #tpu.pipeline_mode<synchronous>, transform_indices = @transform_4, window_bounds = array<i64: 1, 512>}, {pipeline_mode = #tpu.pipeline_mode<synchronous>, transform_indices = @transform_5, window_bounds = array<i64: 512, 128>}, {pipeline_mode = #tpu.pipeline_mode<synchronous>, transform_indices = @transform_6, window_bounds = array<i64: 1, 128>}, {transform_indices = @transform_7, window_bounds = array<i64: 16, 128>}]} {
    %c0 = arith.constant 0 : index
    %c0_0 = arith.constant 0 : index
    %0 = vector.load %arg1[%c0, %c0_0] : memref<16x784xf32, #tpu.memory_space<vmem>>, vector<16x784xf32>
    %1 = arith.truncf %0 : vector<16x784xf32> to vector<16x784xbf16>
    %c0_1 = arith.constant 0 : index
    %c0_2 = arith.constant 0 : index
    %2 = vector.load %arg2[%c0_1, %c0_2] : memref<784x512xbf16, #tpu.memory_space<vmem>>, vector<784x512xbf16>
    %cst = arith.constant dense<0.000000e+00> : vector<16x512xf32>
    %3 = tpu.matmul %1, %2, %cst {dimension_numbers = #tpu.dot_dimension_numbers<[1], [0], [0], [1], [0, 0, 1, 1], [], []>} : vector<16x784xbf16>, vector<784x512xbf16>, vector<16x512xf32> -> vector<16x512xf32>
    %c0_3 = arith.constant 0 : index
    %c0_4 = arith.constant 0 : index
    %4 = vector.load %arg3[%c0_3, %c0_4] : memref<1x512xf32, #tpu.memory_space<vmem>>, vector<1x512xf32>
    %5 = vector.broadcast %4 : vector<1x512xf32> to vector<16x512xf32>
    %6 = arith.addf %3, %5 : vector<16x512xf32>
    %cst_5 = arith.constant 0.000000e+00 : f32
    %7 = vector.broadcast %cst_5 : f32 to vector<16x512xf32>
    %8 = arith.maximumf %6, %7 : vector<16x512xf32>
    %9 = arith.truncf %8 : vector<16x512xf32> to vector<16x512xbf16>
    %c0_6 = arith.constant 0 : index
    %c0_7 = arith.constant 0 : index
    %10 = vector.load %arg4[%c0_6, %c0_7] : memref<512x512xbf16, #tpu.memory_space<vmem>>, vector<512x512xbf16>
    %cst_8 = arith.constant dense<0.000000e+00> : vector<16x512xf32>
    %11 = tpu.matmul %9, %10, %cst_8 {dimension_numbers = #tpu.dot_dimension_numbers<[1], [0], [0], [1], [0, 0, 1, 1], [], []>} : vector<16x512xbf16>, vector<512x512xbf16>, vector<16x512xf32> -> vector<16x512xf32>
    %c0_9 = arith.constant 0 : index
    %c0_10 = arith.constant 0 : index
    %12 = vector.load %arg5[%c0_9, %c0_10] : memref<1x512xf32, #tpu.memory_space<vmem>>, vector<1x512xf32>
    %13 = vector.broadcast %12 : vector<1x512xf32> to vector<16x512xf32>
    %14 = arith.addf %11, %13 : vector<16x512xf32>
    %cst_11 = arith.constant 0.000000e+00 : f32
    %15 = vector.broadcast %cst_11 : f32 to vector<16x512xf32>
    %16 = arith.maximumf %14, %15 : vector<16x512xf32>
    %17 = arith.truncf %16 : vector<16x512xf32> to vector<16x512xbf16>
    %c0_12 = arith.constant 0 : index
    %c0_13 = arith.constant 0 : index
    %18 = vector.load %arg6[%c0_12, %c0_13] : memref<512x128xbf16, #tpu.memory_space<vmem>>, vector<512x128xbf16>
    %cst_14 = arith.constant dense<0.000000e+00> : vector<16x128xf32>
    %19 = tpu.matmul %17, %18, %cst_14 {dimension_numbers = #tpu.dot_dimension_numbers<[1], [0], [0], [1], [0, 0, 1, 1], [], []>} : vector<16x512xbf16>, vector<512x128xbf16>, vector<16x128xf32> -> vector<16x128xf32>
    %c0_15 = arith.constant 0 : index
    %c0_16 = arith.constant 0 : index
    %20 = vector.load %arg7[%c0_15, %c0_16] : memref<1x128xf32, #tpu.memory_space<vmem>>, vector<1x128xf32>
    %21 = vector.broadcast %20 : vector<1x128xf32> to vector<16x128xf32>
    %22 = arith.addf %19, %21 : vector<16x128xf32>
    %23 = arith.truncf %22 : vector<16x128xf32> to vector<16x128xbf16>
    %c0_17 = arith.constant 0 : index
    %c0_18 = arith.constant 0 : index
    %24 = vector.load %arg8[%c0_17, %c0_18] : memref<16x128xbf16, #tpu.memory_space<vmem>>, vector<16x128xbf16>
    tpu.vector_store %arg8[%c0_17, %c0_18], %23 {strides = array<i32>} : memref<16x128xbf16, #tpu.memory_space<vmem>>, vector<16x128xbf16>,
    return
  }
  func.func @transform_0(%arg0: i32) -> (i32, i32) {
    %c0_i32 = arith.constant 0 : i32
    %c0_i32_0 = arith.constant 0 : i32
    return %arg0, %c0_i32 : i32, i32
  }
  func.func @transform_1(%arg0: i32) -> (i32, i32) {
    %c0_i32 = arith.constant 0 : i32
    %c0_i32_0 = arith.constant 0 : i32
    %c0_i32_1 = arith.constant 0 : i32
    return %c0_i32, %c0_i32_0 : i32, i32
  }
  func.func @transform_2(%arg0: i32) -> (i32, i32) {
    %c0_i32 = arith.constant 0 : i32
    %c0_i32_0 = arith.constant 0 : i32
    %c0_i32_1 = arith.constant 0 : i32
    return %c0_i32, %c0_i32_0 : i32, i32
  }
  func.func @transform_3(%arg0: i32) -> (i32, i32) {
    %c0_i32 = arith.constant 0 : i32
    %c0_i32_0 = arith.constant 0 : i32
    %c0_i32_1 = arith.constant 0 : i32
    return %c0_i32, %c0_i32_0 : i32, i32
  }
  func.func @transform_4(%arg0: i32) -> (i32, i32) {
    %c0_i32 = arith.constant 0 : i32
    %c0_i32_0 = arith.constant 0 : i32
    %c0_i32_1 = arith.constant 0 : i32
    return %c0_i32, %c0_i32_0 : i32, i32
  }
  func.func @transform_5(%arg0: i32) -> (i32, i32) {
    %c0_i32 = arith.constant 0 : i32
    %c0_i32_0 = arith.constant 0 : i32
    %c0_i32_1 = arith.constant 0 : i32
    return %c0_i32, %c0_i32_0 : i32, i32
  }
  func.func @transform_6(%arg0: i32) -> (i32, i32) {
    %c0_i32 = arith.constant 0 : i32
    %c0_i32_0 = arith.constant 0 : i32
    %c0_i32_1 = arith.constant 0 : i32
    return %c0_i32, %c0_i32_0 : i32, i32
  }
  func.func @transform_7(%arg0: i32) -> (i32, i32) {
    %c0_i32 = arith.constant 0 : i32
    %c0_i32_0 = arith.constant 0 : i32
    return %arg0, %c0_i32 : i32, i32
  }
}

</mosaic_0001>

<bundles_post_ra>
// kernel: neural_network_forward.1
= control target key start
LH: loop header
LB: loop body
LE: loop exit
PB: predicated region body
PF: predicated region fallthrough
CT: control target
= control target key end

     0   :  { %vm1246_vm0 = vcmask 130048   ;;  %s5107_s1 = inlined_call_operand.vmem [shape: bf16[784,512], index: 1, kind: input, shape index: {}]   ;;  %s5108_s0 = inlined_call_operand.vmem [shape: f32[16,784], index: 0, kind: input, shape index: {}]   ;;  %s5109_s3 = inlined_call_operand.vmem [shape: bf16[512,512], index: 3, kind: input, shape index: {}]   ;;  %s5110_s5 = inlined_call_operand.vmem [shape: bf16[512,128], index: 5, kind: input, shape index: {}]   ;;  %s5111_s2 = inlined_call_operand.vmem [shape: f32[1,512], index: 2, kind: input, shape index: {}]   ;;  %s5112_s4 = inlined_call_operand.vmem [shape: f32[1,512], index: 4, kind: input, shape index: {}]   ;;  %s5113_s6 = inlined_call_operand.vmem [shape: f32[1,128], index: 6, kind: input, shape index: {}]   ;;  %s5114_s7 = inlined_call_operand.vmem [shape: bf16[16,128], index: 7, kind: output, shape index: {}]  }
   0x1   :  { %v3400_v0 = vld [vmem:[%s5107_s1 + $0x4] ss:$16 sps:$4 sm:$0xff]   ;;  %v3402_v1 = vld [vmem:[%s5107_s1 + $0xc] ss:$16 sps:$4 sm:$0xff]   ;;  %v3404_v2 = vld [vmem:[%s5107_s1] ss:$16 sps:$4 sm:$0xff]  }
   0x2   :  { %1250 = vmatprep.subr.bf16.mxu0 %v3400_v0  ;;  %v3405_v3 = vld [vmem:[%s5107_s1 + $0x8] ss:$16 sps:$4 sm:$0xff]   ;;  %1422 = vmatprep.subr.bf16.mxu1 %v3402_v1  ;;  %v3406_v4 = vld [vmem:[%s5107_s1 + $0x24] ss:$16 sps:$4 sm:$0xff]   ;;  %v3408_v5 = vld [vmem:[%s5107_s1 + $0x2c] ss:$16 sps:$4 sm:$0xff]  }
   0x3   :  { %1251 = vmatpush1.bf16.msra.mxu0 %v3404_v2  ;;  %1423 = vmatpush1.bf16.msra.mxu1 %v3405_v3  ;;  %v3410_v6 = vld [vmem:[%s5107_s1 + $0x20] ss:$16 sps:$4 sm:$0xff]   ;;  %v3411_v7 = vld [vmem:[%s5107_s1 + $0x28] ss:$16 sps:$4 sm:$0xff]   ;;  %v3412_v8 = vld [vmem:[%s5107_s1 + $0x44] ss:$16 sps:$4 sm:$0xff]  }
   0x4   :  { %1252 = vmatprep.subr.bf16.mxu0 %v3406_v4  ;;  %1424 = vmatprep.subr.bf16.mxu1 %v3408_v5  ;;  %v3414_v9 = vld [vmem:[%s5107_s1 + $0x4c] ss:$16 sps:$4 sm:$0xff]   ;;  %v3416_v10 = vld [vmem:[%s5107_s1 + $0x40] ss:$16 sps:$4 sm:$0xff]   ;;  %v3417_v11 = vld [vmem:[%s5107_s1 + $0x48] ss:$16 sps:$4 sm:$0xff]  }
   0x5   :  { %v3418_v12 = vld [vmem:[%s5107_s1 + $0x64] ss:$16 sps:$4 sm:$0xff]   ;;  %v3420_v13 = vld [vmem:[%s5107_s1 + $0x6c] ss:$16 sps:$4 sm:$0xff]   ;;  %v3422_v14 = vld [vmem:[%s5107_s1 + $0x60] ss:$16 sps:$4 sm:$0xff]  }
   0x6   :  { %v3423_v15 = vld [vmem:[%s5107_s1 + $0x68] ss:$16 sps:$4 sm:$0xff]   ;;  %v3424_v16 = vld [vmem:[%s5107_s1 + $0x84] ss:$16 sps:$4 sm:$0xff]   ;;  %v3426_v17 = vld [vmem:[%s5107_s1 + $0x8c] ss:$16 sps:$4 sm:$0xff]  }
   0x7   :  { %1253 = vmatpush1.bf16.msra.mxu0 %v3410_v6  ;;  %1425 = vmatpush1.bf16.msra.mxu1 %v3411_v7  ;;  %v3428_v18 = vld [vmem:[%s5107_s1 + $0x80] ss:$16 sps:$4 sm:$0xff]   ;;  %v3429_v19 = vld [vmem:[%s5107_s1 + $0x88] ss:$16 sps:$4 sm:$0xff]   ;;  %v3430_v20 = vld [vmem:[%s5107_s1 + $0xa4] ss:$16 sps:$4 sm:$0xff]  }
   0x8   :  { %1254 = vmatprep.subr.bf16.mxu0 %v3412_v8  ;;  %1426 = vmatprep.subr.bf16.mxu1 %v3414_v9  ;;  %v3432_v21 = vld [vmem:[%s5107_s1 + $0xac] ss:$16 sps:$4 sm:$0xff]   ;;  %v3434_v22 = vld [vmem:[%s5107_s1 + $0xa0] ss:$16 sps:$4 sm:$0xff]   ;;  %v3435_v23 = vld [vmem:[%s5107_s1 + $0xa8] ss:$16 sps:$4 sm:$0xff]  }
   0x9   :  { %v3436_v24 = vld [vmem:[%s5107_s1 + $0xc4] ss:$16 sps:$4 sm:$0xff]   ;;  %v3438_v25 = vld [vmem:[%s5107_s1 + $0xcc] ss:$16 sps:$4 sm:$0xff]   ;;  %v3440_v26 = vld [vmem:[%s5107_s1 + $0xc0] ss:$16 sps:$4 sm:$0xff]  }
   0xa   :  { %v3441_v27 = vld [vmem:[%s5107_s1 + $0xc8] ss:$16 sps:$4 sm:$0xff]   ;;  %v3442_v28 = vld [vmem:[%s5107_s1 + $0xe4] ss:$16 sps:$4 sm:$0xff]   ;;  %v3444_v29 = vld [vmem:[%s5107_s1 + $0xec] ss:$16 sps:$4 sm:$0xff]  }
   0xb   :  { %1255 = vmatpush1.bf16.msra.mxu0 %v3416_v10  ;;  %1427 = vmatpush1.bf16.msra.mxu1 %v3417_v11  ;;  %v3446_v30 = vld [vmem:[%s5107_s1 + $0xe0] ss:$16 sps:$4 sm:$0xff]   ;;  %v3447_v31 = vld [vmem:[%s5107_s1 + $0xe8] ss:$16 sps:$4 sm:$0xff]   ;;  %v3448_v32 = vld [vmem:[%s5107_s1 + $0x104] ss:$16 sps:$4 sm:$0xff]  }
   0xc   :  { %1256 = vmatprep.subr.bf16.mxu0 %v3418_v12  ;;  %1428 = vmatprep.subr.bf16.mxu1 %v3420_v13  ;;  %v3450_v33 = vld [vmem:[%s5107_s1 + $0x10c] ss:$16 sps:$4 sm:$0xff]   ;;  %v3452_v34 = vld [vmem:[%s5107_s1 + $0x100] ss:$16 sps:$4 sm:$0xff]   ;;  %v3453_v35 = vld [vmem:[%s5107_s1 + $0x108] ss:$16 sps:$4 sm:$0xff]  }
   0xd   :  { %v3454_v36 = vld [vmem:[%s5107_s1 + $0x124] ss:$16 sps:$4 sm:$0xff]   ;;  %v3456_v37 = vld [vmem:[%s5107_s1 + $0x12c] ss:$16 sps:$4 sm:$0xff]   ;;  %v3458_v38 = vld [vmem:[%s5107_s1 + $0x120] ss:$16 sps:$4 sm:$0xff]  }
   0xe   :  { %v3459_v39 = vld [vmem:[%s5107_s1 + $0x128] ss:$16 sps:$4 sm:$0xff]   ;;  %v3460_v40 = vld [vmem:[%s5107_s1 + $0x144] ss:$16 sps:$4 sm:$0xff]   ;;  %v3462_v41 = vld [vmem:[%s5107_s1 + $0x14c] ss:$16 sps:$4 sm:$0xff]  }
   0xf   :  { %1257 = vmatpush1.bf16.msra.mxu0 %v3422_v14  ;;  %1429 = vmatpush1.bf16.msra.mxu1 %v3423_v15  ;;  %v3464_v42 = vld [vmem:[%s5107_s1 + $0x140] ss:$16 sps:$4 sm:$0xff]   ;;  %v3465_v43 = vld [vmem:[%s5107_s1 + $0x148] ss:$16 sps:$4 sm:$0xff]   ;;  %v3466_v44 = vld [vmem:[%s5107_s1 + $0x164] ss:$16 sps:$4 sm:$0xff]  }
  0x10   :  { %1258 = vmatprep.subr.bf16.mxu0 %v3424_v16  ;;  %1430 = vmatprep.subr.bf16.mxu1 %v3426_v17  ;;  %v3468_v45 = vld [vmem:[%s5107_s1 + $0x16c] ss:$16 sps:$4 sm:$0xff]   ;;  %v35_v47 = vld [vmem:[%s5108_s0 + $0x40] sm:$0xff]  ;;  %v3471_v49 = vld [vmem:[%s5107_s1 + $0x168] ss:$16 sps:$4 sm:$0xff]  }
  0x11   :  { %v28_v46 = vld [vmem:[%s5108_s0 + $0x8] sm:$0xff]  ;;  %v3470_v48 = vld [vmem:[%s5107_s1 + $0x160] ss:$16 sps:$4 sm:$0xff]   ;;  %v3472_v51 = vld [vmem:[%s5107_s1 + $0x184] ss:$16 sps:$4 sm:$0xff]  }
  0x12   :  { %v42_v50 = vpack.c.bf16 %v35_v47, %v28_v46  ;;  %v3474_v52 = vld [vmem:[%s5107_s1 + $0x18c] ss:$16 sps:$4 sm:$0xff]   ;;  %v3476_v53 = vld [vmem:[%s5107_s1 + $0x180] ss:$16 sps:$4 sm:$0xff]   ;;  %v3477_v54 = vld [vmem:[%s5107_s1 + $0x188] ss:$16 sps:$4 sm:$0xff]  }
  0x13   :  { %1259 = vmatpush1.bf16.msra.mxu0 %v3428_v18  ;;  %1431 = vmatpush1.bf16.msra.mxu1 %v3429_v19  ;;  %v3478_v55 = vld [vmem:[%s5107_s1 + $0x1a4] ss:$16 sps:$4 sm:$0xff]   ;;  %v3480_v56 = vld [vmem:[%s5107_s1 + $0x1ac] ss:$16 sps:$4 sm:$0xff]   ;;  %v3482_v57 = vld [vmem:[%s5107_s1 + $0x1a0] ss:$16 sps:$4 sm:$0xff]  }
  0x14   :  { %1260 = vmatprep.subr.bf16.mxu0 %v3430_v20  ;;  %1432 = vmatprep.subr.bf16.mxu1 %v3432_v21  ;;  %v3483_v58 = vld [vmem:[%s5107_s1 + $0x1a8] ss:$16 sps:$4 sm:$0xff]   ;;  %v3484_v59 = vld [vmem:[%s5107_s1 + $0x1c4] ss:$16 sps:$4 sm:$0xff]   ;;  %v3486_v60 = vld [vmem:[%s5107_s1 + $0x1cc] ss:$16 sps:$4 sm:$0xff]  }
  0x15   :  { %1282 = vmatprep.mubr.bf16.mxu0 %v42_v50  ;;  %1454 = vmatprep.mubr.bf16.mxu1 %v42_v50  ;;  %v3488_v61 = vld [vmem:[%s5107_s1 + $0x1c0] ss:$16 sps:$4 sm:$0xff]   ;;  %v3489_v62 = vld [vmem:[%s5107_s1 + $0x1c8] ss:$16 sps:$4 sm:$0xff]   ;;  %v3490_v63 = vld [vmem:[%s5107_s1 + $0x1e4] ss:$16 sps:$4 sm:$0xff]  }
  0x16   :  { %v3492_v0 = vld [vmem:[%s5107_s1 + $0x1ec] ss:$16 sps:$4 sm:$0xff]   ;;  %v3494_v1 = vld [vmem:[%s5107_s1 + $0x1e0] ss:$16 sps:$4 sm:$0xff]   ;;  %v3495_v2 = vld [vmem:[%s5107_s1 + $0x1e8] ss:$16 sps:$4 sm:$0xff]  }
  0x17   :  { %1261 = vmatpush1.bf16.msra.mxu0 %v3434_v22  ;;  %1433 = vmatpush1.bf16.msra.mxu1 %v3435_v23  ;;  %v3498_v3 = vld [vmem:[%s5107_s1 + $0x204] ss:$16 sps:$4 sm:$0xff]   ;;  %v34_v5 = vld [vmem:[%s5108_s0 + $0x38] sm:$0xff]  ;;  %v3496_v7 = vld [vmem:[%s5107_s1 + $0x200] ss:$16 sps:$4 sm:$0xff]  }
  0x18   :  { %1262 = vmatprep.subr.bf16.mxu0 %v3436_v24  ;;  %1434 = vmatprep.subr.bf16.mxu1 %v3438_v25  ;;  %v27_v4 = vld [vmem:[%s5108_s0] sm:$0xff]  ;;  %v3501_v6 = vld [vmem:[%s5107_s1 + $0x20c] ss:$16 sps:$4 sm:$0xff]   ;;  %v3499_v8 = vld [vmem:[%s5107_s1 + $0x208] ss:$16 sps:$4 sm:$0xff]  }
  0x19   :  { %v41_v9 = vpack.c.bf16 %v34_v5, %v27_v4  ;;  %v3504_v10 = vld [vmem:[%s5107_s1 + $0x224] ss:$16 sps:$4 sm:$0xff]   ;;  %v3507_v11 = vld [vmem:[%s5107_s1 + $0x22c] ss:$16 sps:$4 sm:$0xff]   ;;  %v3502_v12 = vld [vmem:[%s5107_s1 + $0x220] ss:$16 sps:$4 sm:$0xff]  }
  0x1a   :  { %v3505_v13 = vld [vmem:[%s5107_s1 + $0x228] ss:$16 sps:$4 sm:$0xff]   ;;  %v3510_v14 = vld [vmem:[%s5107_s1 + $0x244] ss:$16 sps:$4 sm:$0xff]   ;;  %v3513_v15 = vld [vmem:[%s5107_s1 + $0x24c] ss:$16 sps:$4 sm:$0xff]  }
  0x1b   :  { %1263 = vmatpush1.bf16.msra.mxu0 %v3440_v26  ;;  %1435 = vmatpush1.bf16.msra.mxu1 %v3441_v27  ;;  %v3508_v16 = vld [vmem:[%s5107_s1 + $0x240] ss:$16 sps:$4 sm:$0xff]   ;;  %v3511_v17 = vld [vmem:[%s5107_s1 + $0x248] ss:$16 sps:$4 sm:$0xff]   ;;  %v3516_v18 = vld [vmem:[%s5107_s1 + $0x264] ss:$16 sps:$4 sm:$0xff]  }
  0x1c   :  { %1264 = vmatprep.subr.bf16.mxu0 %v3442_v28  ;;  %1436 = vmatprep.subr.bf16.mxu1 %v3444_v29  ;;  %v3519_v19 = vld [vmem:[%s5107_s1 + $0x26c] ss:$16 sps:$4 sm:$0xff]   ;;  %v3514_v20 = vld [vmem:[%s5107_s1 + $0x260] ss:$16 sps:$4 sm:$0xff]   ;;  %v3517_v21 = vld [vmem:[%s5107_s1 + $0x268] ss:$16 sps:$4 sm:$0xff]  }
  0x1d   :  { %v3522_v22 = vld [vmem:[%s5107_s1 + $0x284] ss:$16 sps:$4 sm:$0xff]   ;;  %v3525_v23 = vld [vmem:[%s5107_s1 + $0x28c] ss:$16 sps:$4 sm:$0xff]   ;;  %v3520_v24 = vld [vmem:[%s5107_s1 + $0x280] ss:$16 sps:$4 sm:$0xff]  }
  0x1e   :  { %v3523_v25 = vld [vmem:[%s5107_s1 + $0x288] ss:$16 sps:$4 sm:$0xff]   ;;  %v3528_v26 = vld [vmem:[%s5107_s1 + $0x2a4] ss:$16 sps:$4 sm:$0xff]   ;;  %v3531_v27 = vld [vmem:[%s5107_s1 + $0x2ac] ss:$16 sps:$4 sm:$0xff]  }
  0x1f   :  { %1265 = vmatpush1.bf16.msra.mxu0 %v3446_v30  ;;  %1437 = vmatpush1.bf16.msra.mxu1 %v3447_v31  ;;  %v3526_v28 = vld [vmem:[%s5107_s1 + $0x2a0] ss:$16 sps:$4 sm:$0xff]   ;;  %v3529_v29 = vld [vmem:[%s5107_s1 + $0x2a8] ss:$16 sps:$4 sm:$0xff]   ;;  %v3534_v30 = vld [vmem:[%s5107_s1 + $0x2c4] ss:$16 sps:$4 sm:$0xff]  }
  0x20   :  { %1266 = vmatprep.subr.bf16.mxu0 %v3448_v32  ;;  %1438 = vmatprep.subr.bf16.mxu1 %v3450_v33  ;;  %v3537_v31 = vld [vmem:[%s5107_s1 + $0x2cc] ss:$16 sps:$4 sm:$0xff]   ;;  %v37_v33 = vld [vmem:[%s5108_s0 + $0x50] sm:$0xff]  ;;  %v3583_v4 = vld [vmem:[%s5107_s1 + $0x3c8] ss:$16 sps:$4 sm:$0xff]  }
  0x21   :  { %v30_v32 = vld [vmem:[%s5108_s0 + $0x18] sm:$0xff]  ;;  %v3550_v47 = vld [vmem:[%s5107_s1 + $0x320] ss:$16 sps:$4 sm:$0xff]   ;;  %v3588_v5 = vld [vmem:[%s5107_s1 + $0x3e4] ss:$16 sps:$4 sm:$0xff]  }
  0x22   :  { %v3555_v46 = vld [vmem:[%s5107_s1 + $0x32c] ss:$16 sps:$4 sm:$0xff]  }
  0x23   :  { %1267 = vmatpush1.bf16.msra.mxu0 %v3452_v34  ;;  %1439 = vmatpush1.bf16.msra.mxu1 %v3453_v35  ;;  %v3532_v34 = vld [vmem:[%s5107_s1 + $0x2c0] ss:$16 sps:$4 sm:$0xff]   ;;  %v3535_v35 = vld [vmem:[%s5107_s1 + $0x2c8] ss:$16 sps:$4 sm:$0xff]   ;;  %v3561_v50 = vld [vmem:[%s5107_s1 + $0x34c] ss:$16 sps:$4 sm:$0xff]  }
  0x24   :  { %1268 = vmatprep.subr.bf16.mxu0 %v3454_v36  ;;  %1440 = vmatprep.subr.bf16.mxu1 %v3456_v37  ;;  %v44_v36 = vpack.c.bf16 %v37_v33, %v30_v32  ;;  %v3540_v37 = vld [vmem:[%s5107_s1 + $0x2e4] ss:$16 sps:$4 sm:$0xff]   ;;  %v3621_v32 = vld [vmem:[%s5107_s1 + $0x48c] ss:$16 sps:$4 sm:$0xff]   ;;  %v3616_v33 = vld [vmem:[%s5107_s1 + $0x480] ss:$16 sps:$4 sm:$0xff]  }
  0x27   :  { %1269 = vmatpush1.bf16.msra.mxu0 %v3458_v38  ;;  %1441 = vmatpush1.bf16.msra.mxu1 %v3459_v39  ;;  %v3543_v38 = vld [vmem:[%s5107_s1 + $0x2ec] ss:$16 sps:$4 sm:$0xff]   ;;  %v3538_v39 = vld [vmem:[%s5107_s1 + $0x2e0] ss:$16 sps:$4 sm:$0xff]  }
  0x28   :  { %1270 = vmatprep.subr.bf16.mxu0 %v3460_v40  ;;  %1442 = vmatprep.subr.bf16.mxu1 %v3462_v41  ;;  %v3541_v40 = vld [vmem:[%s5107_s1 + $0x2e8] ss:$16 sps:$4 sm:$0xff]   ;;  %v3546_v41 = vld [vmem:[%s5107_s1 + $0x304] ss:$16 sps:$4 sm:$0xff]  }
  0x2b   :  { %1271 = vmatpush1.bf16.msra.mxu0 %v3464_v42  ;;  %1443 = vmatpush1.bf16.msra.mxu1 %v3465_v43  ;;  %v3549_v42 = vld [vmem:[%s5107_s1 + $0x30c] ss:$16 sps:$4 sm:$0xff]   ;;  %v3544_v43 = vld [vmem:[%s5107_s1 + $0x300] ss:$16 sps:$4 sm:$0xff]  }
  0x2c   :  { %1272 = vmatprep.subr.bf16.mxu0 %v3466_v44  ;;  %1444 = vmatprep.subr.bf16.mxu1 %v3468_v45  ;;  %v3547_v44 = vld [vmem:[%s5107_s1 + $0x308] ss:$16 sps:$4 sm:$0xff]   ;;  %v3552_v45 = vld [vmem:[%s5107_s1 + $0x324] ss:$16 sps:$4 sm:$0xff]  }
  0x2f   :  { %1273 = vmatpush1.bf16.msra.mxu0 %v3470_v48  ;;  %1445 = vmatpush1.bf16.msra.mxu1 %v3471_v49  ;;  %v3553_v48 = vld [vmem:[%s5107_s1 + $0x328] ss:$16 sps:$4 sm:$0xff]   ;;  %v3558_v49 = vld [vmem:[%s5107_s1 + $0x344] ss:$16 sps:$4 sm:$0xff]  }
  0x30   :  { %1274 = vmatprep.subr.bf16.mxu0 %v3472_v51  ;;  %1446 = vmatprep.subr.bf16.mxu1 %v3474_v52  ;;  %v3556_v51 = vld [vmem:[%s5107_s1 + $0x340] ss:$16 sps:$4 sm:$0xff]   ;;  %v3559_v52 = vld [vmem:[%s5107_s1 + $0x348] ss:$16 sps:$4 sm:$0xff]  }
  0x33   :  { %1275 = vmatpush1.bf16.msra.mxu0 %v3476_v53  ;;  %1447 = vmatpush1.bf16.msra.mxu1 %v3477_v54  ;;  %v3564_v53 = vld [vmem:[%s5107_s1 + $0x364] ss:$16 sps:$4 sm:$0xff]   ;;  %v3567_v54 = vld [vmem:[%s5107_s1 + $0x36c] ss:$16 sps:$4 sm:$0xff]  }
  0x34   :  { %1276 = vmatprep.subr.bf16.mxu0 %v3478_v55  ;;  %1448 = vmatprep.subr.bf16.mxu1 %v3480_v56  ;;  %v3562_v55 = vld [vmem:[%s5107_s1 + $0x360] ss:$16 sps:$4 sm:$0xff]   ;;  %v3565_v56 = vld [vmem:[%s5107_s1 + $0x368] ss:$16 sps:$4 sm:$0xff]  }
  0x37   :  { %1277 = vmatpush1.bf16.msra.mxu0 %v3482_v57  ;;  %1449 = vmatpush1.bf16.msra.mxu1 %v3483_v58  ;;  %v3570_v57 = vld [vmem:[%s5107_s1 + $0x384] ss:$16 sps:$4 sm:$0xff]   ;;  %v3573_v58 = vld [vmem:[%s5107_s1 + $0x38c] ss:$16 sps:$4 sm:$0xff]  }
  0x38   :  { %1278 = vmatprep.subr.bf16.mxu0 %v3484_v59  ;;  %1450 = vmatprep.subr.bf16.mxu1 %v3486_v60  ;;  %v3568_v59 = vld [vmem:[%s5107_s1 + $0x380] ss:$16 sps:$4 sm:$0xff]   ;;  %v3571_v60 = vld [vmem:[%s5107_s1 + $0x388] ss:$16 sps:$4 sm:$0xff]  }
  0x3b   :  { %1279 = vmatpush1.bf16.msra.mxu0 %v3488_v61  ;;  %1451 = vmatpush1.bf16.msra.mxu1 %v3489_v62  ;;  %v3576_v61 = vld [vmem:[%s5107_s1 + $0x3a4] ss:$16 sps:$4 sm:$0xff]   ;;  %v3579_v62 = vld [vmem:[%s5107_s1 + $0x3ac] ss:$16 sps:$4 sm:$0xff]  }
  0x3c   :  { %1280 = vmatprep.subr.bf16.mxu0 %v3490_v63  ;;  %1452 = vmatprep.subr.bf16.mxu1 %v3492_v0  ;;  %v3574_v63 = vld [vmem:[%s5107_s1 + $0x3a0] ss:$16 sps:$4 sm:$0xff]   ;;  %v3577_v0 = vld [vmem:[%s5107_s1 + $0x3a8] ss:$16 sps:$4 sm:$0xff]  }
  0x3f   :  { %1281 = vmatpush1.bf16.msra.mxu0 %v3494_v1  ;;  %1453 = vmatpush1.bf16.msra.mxu1 %v3495_v2  ;;  %v3582_v1 = vld [vmem:[%s5107_s1 + $0x3c4] ss:$16 sps:$4 sm:$0xff]   ;;  %v3585_v2 = vld [vmem:[%s5107_s1 + $0x3cc] ss:$16 sps:$4 sm:$0xff]  }
  0x40   :  { %1293 = vmatprep.subr.bf16.mxu0 %v3498_v3  ;;  %1465 = vmatprep.subr.bf16.mxu1 %v3501_v6  ;;  %v3580_v3 = vld [vmem:[%s5107_s1 + $0x3c0] ss:$16 sps:$4 sm:$0xff]   ;;  %v3591_v6 = vld [vmem:[%s5107_s1 + $0x3ec] ss:$16 sps:$4 sm:$0xff]  }
  0x42   :  { %1283 = vmatmul.mubr.bf16.vlgmr.msra.gmra.mrb[0].mxu0 %v41_v9  ;;  %1455 = vmatmul.mubr.bf16.vlgmr.msra.gmra.mrb[0].mxu1 %v41_v9  ;;  %v3594_v9 = vld [vmem:[%s5107_s1 + $0x404] ss:$16 sps:$4 sm:$0xff]  }
  0x43   :  { %1294 = vmatpush1.bf16.msra.mxu0 %v3496_v7  ;;  %1466 = vmatpush1.bf16.msra.mxu1 %v3499_v8  ;;  %v3586_v7 = vld [vmem:[%s5107_s1 + $0x3e0] ss:$16 sps:$4 sm:$0xff]   ;;  %v3589_v8 = vld [vmem:[%s5107_s1 + $0x3e8] ss:$16 sps:$4 sm:$0xff]  }
  0x44   :  { %1295 = vmatprep.subr.bf16.mxu0 %v3504_v10  ;;  %1467 = vmatprep.subr.bf16.mxu1 %v3507_v11  ;;  %v29_v10 = vld [vmem:[%s5108_s0 + $0x10] sm:$0xff]  ;;  %v36_v11 = vld [vmem:[%s5108_s0 + $0x48] sm:$0xff] }
  0x45   :  { %1325 = vmatprep.mubr.bf16.mxu0 %v44_v36  ;;  %1497 = vmatprep.mubr.bf16.mxu1 %v44_v36  ;;  %v3627_v36 = vld [vmem:[%s5107_s1 + $0x4ac] ss:$16 sps:$4 sm:$0xff]  }
  0x47   :  { %1296 = vmatpush1.bf16.msra.mxu0 %v3502_v12  ;;  %1468 = vmatpush1.bf16.msra.mxu1 %v3505_v13  ;;  %v3597_v12 = vld [vmem:[%s5107_s1 + $0x40c] ss:$16 sps:$4 sm:$0xff]   ;;  %v3592_v13 = vld [vmem:[%s5107_s1 + $0x400] ss:$16 sps:$4 sm:$0xff]  }
  0x48   :  { %1297 = vmatprep.subr.bf16.mxu0 %v3510_v14  ;;  %1469 = vmatprep.subr.bf16.mxu1 %v3513_v15  ;;  %v3595_v14 = vld [vmem:[%s5107_s1 + $0x408] ss:$16 sps:$4 sm:$0xff]   ;;  %v43_v15 = vpack.c.bf16 %v36_v11, %v29_v10  ;;  %v3684_v11 = vld [vmem:[%s5107_s1 + $0x5e4] ss:$16 sps:$4 sm:$0xff]  }
  0x49   :  { %v3679_v10 = vld [vmem:[%s5107_s1 + $0x5c8] ss:$16 sps:$4 sm:$0xff]  }
  0x4b   :  { %1298 = vmatpush1.bf16.msra.mxu0 %v3508_v16  ;;  %1470 = vmatpush1.bf16.msra.mxu1 %v3511_v17  ;;  %v3600_v16 = vld [vmem:[%s5107_s1 + $0x424] ss:$16 sps:$4 sm:$0xff]   ;;  %v3603_v17 = vld [vmem:[%s5107_s1 + $0x42c] ss:$16 sps:$4 sm:$0xff]  }
  0x4c   :  { %1299 = vmatprep.subr.bf16.mxu0 %v3516_v18  ;;  %1471 = vmatprep.subr.bf16.mxu1 %v3519_v19  ;;  %v32_v18 = vld [vmem:[%s5108_s0 + $0x28] sm:$0xff]  ;;  %v3598_v19 = vld [vmem:[%s5107_s1 + $0x420] ss:$16 sps:$4 sm:$0xff]  }
  0x4f   :  { %1300 = vmatpush1.bf16.msra.mxu0 %v3514_v20  ;;  %1472 = vmatpush1.bf16.msra.mxu1 %v3517_v21  ;;  %v3601_v20 = vld [vmem:[%s5107_s1 + $0x428] ss:$16 sps:$4 sm:$0xff]   ;;  %v39_v21 = vld [vmem:[%s5108_s0 + $0x60] sm:$0xff] }
  0x50   :  { %1301 = vmatprep.subr.bf16.mxu0 %v3522_v22  ;;  %1473 = vmatprep.subr.bf16.mxu1 %v3525_v23  ;;  %v3606_v22 = vld [vmem:[%s5107_s1 + $0x444] ss:$16 sps:$4 sm:$0xff]   ;;  %v46_v23 = vpack.c.bf16 %v39_v21, %v32_v18  ;;  %v3693_v18 = vld [vmem:[%s5107_s1 + $0x60c] ss:$16 sps:$4 sm:$0xff]  }
  0x53   :  { %1302 = vmatpush1.bf16.msra.mxu0 %v3520_v24  ;;  %1474 = vmatpush1.bf16.msra.mxu1 %v3523_v25  ;;  %v3609_v24 = vld [vmem:[%s5107_s1 + $0x44c] ss:$16 sps:$4 sm:$0xff]   ;;  %v3604_v25 = vld [vmem:[%s5107_s1 + $0x440] ss:$16 sps:$4 sm:$0xff]  }
  0x54   :  { %1303 = vmatprep.subr.bf16.mxu0 %v3528_v26  ;;  %1475 = vmatprep.subr.bf16.mxu1 %v3531_v27  ;;  %v3607_v26 = vld [vmem:[%s5107_s1 + $0x448] ss:$16 sps:$4 sm:$0xff]   ;;  %v3612_v27 = vld [vmem:[%s5107_s1 + $0x464] ss:$16 sps:$4 sm:$0xff]  }
  0x57   :  { %1304 = vmatpush1.bf16.msra.mxu0 %v3526_v28  ;;  %1476 = vmatpush1.bf16.msra.mxu1 %v3529_v29  ;;  %v3615_v28 = vld [vmem:[%s5107_s1 + $0x46c] ss:$16 sps:$4 sm:$0xff]   ;;  %v3610_v29 = vld [vmem:[%s5107_s1 + $0x460] ss:$16 sps:$4 sm:$0xff]  }
  0x58   :  { %1305 = vmatprep.subr.bf16.mxu0 %v3534_v30  ;;  %1477 = vmatprep.subr.bf16.mxu1 %v3537_v31  ;;  %v3613_v30 = vld [vmem:[%s5107_s1 + $0x468] ss:$16 sps:$4 sm:$0xff]   ;;  %v3618_v31 = vld [vmem:[%s5107_s1 + $0x484] ss:$16 sps:$4 sm:$0xff]  }
  0x5b   :  { %1306 = vmatpush1.bf16.msra.mxu0 %v3532_v34  ;;  %1478 = vmatpush1.bf16.msra.mxu1 %v3535_v35  ;;  %v3619_v34 = vld [vmem:[%s5107_s1 + $0x488] ss:$16 sps:$4 sm:$0xff]   ;;  %v3624_v35 = vld [vmem:[%s5107_s1 + $0x4a4] ss:$16 sps:$4 sm:$0xff]  }
  0x5c   :  { %1307 = vmatprep.subr.bf16.mxu0 %v3540_v37  ;;  %1479 = vmatprep.subr.bf16.mxu1 %v3543_v38  ;;  %v3622_v37 = vld [vmem:[%s5107_s1 + $0x4a0] ss:$16 sps:$4 sm:$0xff]   ;;  %v3625_v38 = vld [vmem:[%s5107_s1 + $0x4a8] ss:$16 sps:$4 sm:$0xff]  }
  0x5f   :  { %1308 = vmatpush1.bf16.msra.mxu0 %v3538_v39  ;;  %1480 = vmatpush1.bf16.msra.mxu1 %v3541_v40  ;;  %v3630_v39 = vld [vmem:[%s5107_s1 + $0x4c4] ss:$16 sps:$4 sm:$0xff]   ;;  %v3633_v40 = vld [vmem:[%s5107_s1 + $0x4cc] ss:$16 sps:$4 sm:$0xff]  }
  0x60   :  { %1309 = vmatprep.subr.bf16.mxu0 %v3546_v41  ;;  %1481 = vmatprep.subr.bf16.mxu1 %v3549_v42  ;;  %v3628_v41 = vld [vmem:[%s5107_s1 + $0x4c0] ss:$16 sps:$4 sm:$0xff]   ;;  %v3631_v42 = vld [vmem:[%s5107_s1 + $0x4c8] ss:$16 sps:$4 sm:$0xff]  }
  0x63   :  { %1310 = vmatpush1.bf16.msra.mxu0 %v3544_v43  ;;  %1482 = vmatpush1.bf16.msra.mxu1 %v3547_v44  ;;  %v3636_v43 = vld [vmem:[%s5107_s1 + $0x4e4] ss:$16 sps:$4 sm:$0xff]   ;;  %v3639_v44 = vld [vmem:[%s5107_s1 + $0x4ec] ss:$16 sps:$4 sm:$0xff]  }
  0x64   :  { %1311 = vmatprep.subr.bf16.mxu0 %v3552_v45  ;;  %1483 = vmatprep.subr.bf16.mxu1 %v3555_v46  ;;  %v3634_v45 = vld [vmem:[%s5107_s1 + $0x4e0] ss:$16 sps:$4 sm:$0xff]   ;;  %v3637_v46 = vld [vmem:[%s5107_s1 + $0x4e8] ss:$16 sps:$4 sm:$0xff]  }
  0x67   :  { %1312 = vmatpush1.bf16.msra.mxu0 %v3550_v47  ;;  %1484 = vmatpush1.bf16.msra.mxu1 %v3553_v48  ;;  %v3642_v47 = vld [vmem:[%s5107_s1 + $0x504] ss:$16 sps:$4 sm:$0xff]   ;;  %v3645_v48 = vld [vmem:[%s5107_s1 + $0x50c] ss:$16 sps:$4 sm:$0xff]  }
  0x68   :  { %1313 = vmatprep.subr.bf16.mxu0 %v3558_v49  ;;  %1485 = vmatprep.subr.bf16.mxu1 %v3561_v50  ;;  %v3640_v49 = vld [vmem:[%s5107_s1 + $0x500] ss:$16 sps:$4 sm:$0xff]   ;;  %v3643_v50 = vld [vmem:[%s5107_s1 + $0x508] ss:$16 sps:$4 sm:$0xff]  }
  0x6b   :  { %1314 = vmatpush1.bf16.msra.mxu0 %v3556_v51  ;;  %1486 = vmatpush1.bf16.msra.mxu1 %v3559_v52  ;;  %v3648_v51 = vld [vmem:[%s5107_s1 + $0x524] ss:$16 sps:$4 sm:$0xff]   ;;  %v3651_v52 = vld [vmem:[%s5107_s1 + $0x52c] ss:$16 sps:$4 sm:$0xff]  }
  0x6c   :  { %1315 = vmatprep.subr.bf16.mxu0 %v3564_v53  ;;  %1487 = vmatprep.subr.bf16.mxu1 %v3567_v54  ;;  %v3646_v53 = vld [vmem:[%s5107_s1 + $0x520] ss:$16 sps:$4 sm:$0xff]   ;;  %v3649_v54 = vld [vmem:[%s5107_s1 + $0x528] ss:$16 sps:$4 sm:$0xff]  }
  0x6f   :  { %1316 = vmatpush1.bf16.msra.mxu0 %v3562_v55  ;;  %1488 = vmatpush1.bf16.msra.mxu1 %v3565_v56  ;;  %v3654_v55 = vld [vmem:[%s5107_s1 + $0x544] ss:$16 sps:$4 sm:$0xff]   ;;  %v3657_v56 = vld [vmem:[%s5107_s1 + $0x54c] ss:$16 sps:$4 sm:$0xff]  }
  0x70   :  { %1317 = vmatprep.subr.bf16.mxu0 %v3570_v57  ;;  %1489 = vmatprep.subr.bf16.mxu1 %v3573_v58  ;;  %v3652_v57 = vld [vmem:[%s5107_s1 + $0x540] ss:$16 sps:$4 sm:$0xff]   ;;  %v3655_v58 = vld [vmem:[%s5107_s1 + $0x548] ss:$16 sps:$4 sm:$0xff]  }
  0x73   :  { %1318 = vmatpush1.bf16.msra.mxu0 %v3568_v59  ;;  %1490 = vmatpush1.bf16.msra.mxu1 %v3571_v60  ;;  %v3660_v59 = vld [vmem:[%s5107_s1 + $0x564] ss:$16 sps:$4 sm:$0xff]   ;;  %v3663_v60 = vld [vmem:[%s5107_s1 + $0x56c] ss:$16 sps:$4 sm:$0xff]  }
  0x74   :  { %1319 = vmatprep.subr.bf16.mxu0 %v3576_v61  ;;  %1491 = vmatprep.subr.bf16.mxu1 %v3579_v62  ;;  %v3658_v61 = vld [vmem:[%s5107_s1 + $0x560] ss:$16 sps:$4 sm:$0xff]   ;;  %v3661_v62 = vld [vmem:[%s5107_s1 + $0x568] ss:$16 sps:$4 sm:$0xff]  }
  0x77   :  { %1320 = vmatpush1.bf16.msra.mxu0 %v3574_v63  ;;  %1492 = vmatpush1.bf16.msra.mxu1 %v3577_v0  ;;  %v3666_v63 = vld [vmem:[%s5107_s1 + $0x584] ss:$16 sps:$4 sm:$0xff]   ;;  %v3669_v0 = vld [vmem:[%s5107_s1 + $0x58c] ss:$16 sps:$4 sm:$0xff]  }
  0x78   :  { %1321 = vmatprep.subr.bf16.mxu0 %v3582_v1  ;;  %1493 = vmatprep.subr.bf16.mxu1 %v3585_v2  ;;  %v3664_v1 = vld [vmem:[%s5107_s1 + $0x580] ss:$16 sps:$4 sm:$0xff]   ;;  %v3667_v2 = vld [vmem:[%s5107_s1 + $0x588] ss:$16 sps:$4 sm:$0xff]  }
  0x7b   :  { %1322 = vmatpush1.bf16.msra.mxu0 %v3580_v3  ;;  %1494 = vmatpush1.bf16.msra.mxu1 %v3583_v4  ;;  %v3672_v3 = vld [vmem:[%s5107_s1 + $0x5a4] ss:$16 sps:$4 sm:$0xff]   ;;  %v3675_v4 = vld [vmem:[%s5107_s1 + $0x5ac] ss:$16 sps:$4 sm:$0xff]  }
  0x7c   :  { %1323 = vmatprep.subr.bf16.mxu0 %v3588_v5  ;;  %1495 = vmatprep.subr.bf16.mxu1 %v3591_v6  ;;  %v3670_v5 = vld [vmem:[%s5107_s1 + $0x5a0] ss:$16 sps:$4 sm:$0xff]   ;;  %v3673_v6 = vld [vmem:[%s5107_s1 + $0x5a8] ss:$16 sps:$4 sm:$0xff]  }
  0x7f   :  { %1324 = vmatpush1.bf16.msra.mxu0 %v3586_v7  ;;  %1496 = vmatpush1.bf16.msra.mxu1 %v3589_v8  ;;  %v3678_v7 = vld [vmem:[%s5107_s1 + $0x5c4] ss:$16 sps:$4 sm:$0xff]   ;;  %v3681_v8 = vld [vmem:[%s5107_s1 + $0x5cc] ss:$16 sps:$4 sm:$0xff]  }
  0x80   :  { %1336 = vmatprep.subr.bf16.mxu0 %v3594_v9  ;;  %1508 = vmatprep.subr.bf16.mxu1 %v3597_v12  ;;  %v3676_v9 = vld [vmem:[%s5107_s1 + $0x5c0] ss:$16 sps:$4 sm:$0xff]   ;;  %v3687_v12 = vld [vmem:[%s5107_s1 + $0x5ec] ss:$16 sps:$4 sm:$0xff]  }
  0x82   :  { %1326 = vmatmul.mubr.bf16.vlgmr.msra.gmra.mrb[0].mxu0 %v43_v15  ;;  %1498 = vmatmul.mubr.bf16.vlgmr.msra.gmra.mrb[0].mxu1 %v43_v15  ;;  %v31_v15 = vld [vmem:[%s5108_s0 + $0x20] sm:$0xff] }
  0x83   :  { %1337 = vmatpush1.bf16.msra.mxu0 %v3592_v13  ;;  %1509 = vmatpush1.bf16.msra.mxu1 %v3595_v14  ;;  %v3682_v13 = vld [vmem:[%s5107_s1 + $0x5e0] ss:$16 sps:$4 sm:$0xff]   ;;  %v3685_v14 = vld [vmem:[%s5107_s1 + $0x5e8] ss:$16 sps:$4 sm:$0xff]  }
  0x84   :  { %1338 = vmatprep.subr.bf16.mxu0 %v3600_v16  ;;  %1510 = vmatprep.subr.bf16.mxu1 %v3603_v17  ;;  %v38_v16 = vld [vmem:[%s5108_s0 + $0x58] sm:$0xff]  ;;  %v3690_v17 = vld [vmem:[%s5107_s1 + $0x604] ss:$16 sps:$4 sm:$0xff]  }
  0x85   :  { %1368 = vmatprep.mubr.bf16.mxu0 %v46_v23  ;;  %1540 = vmatprep.mubr.bf16.mxu1 %v46_v23  ;;  %v45_v21 = vpack.c.bf16 %v38_v16, %v31_v15  ;;  %v3699_v23 = vld [vmem:[%s5109_s3 + $0xc] ss:$16 sps:$4 sm:$0xff]   ;;  %v3772_v16 = vld [vmem:[%s5109_s3 + $0x1a0] ss:$16 sps:$4 sm:$0xff]  }
  0x86   :  { %v3777_v15 = vld [vmem:[%s5109_s3 + $0x1ac] ss:$16 sps:$4 sm:$0xff]  }
  0x87   :  { %1339 = vmatpush1.bf16.msra.mxu0 %v3598_v19  ;;  %1511 = vmatpush1.bf16.msra.mxu1 %v3601_v20  ;;  %v3688_v19 = vld [vmem:[%s5107_s1 + $0x600] ss:$16 sps:$4 sm:$0xff]   ;;  %v3691_v20 = vld [vmem:[%s5107_s1 + $0x608] ss:$16 sps:$4 sm:$0xff]  }
  0x88   :  { %1340 = vmatprep.subr.bf16.mxu0 %v3606_v22  ;;  %1512 = vmatprep.subr.bf16.mxu1 %v3609_v24  ;;  %v3696_v22 = vld [vmem:[%s5109_s3 + $0x4] ss:$16 sps:$4 sm:$0xff]   ;;  %v3918_v24 = vmov 0  }
  0x8b   :  { %1341 = vmatpush1.bf16.msra.mxu0 %v3604_v25  ;;  %1513 = vmatpush1.bf16.msra.mxu1 %v3607_v26  ;;  %v33_v25 = vld [vmem:[%s5108_s0 + $0x30] sm:$0xff]  ;;  %v40_v26 = vld [vmem:[%s5108_s0 + $0x68] sm:$0xff] }
  0x8c   :  { %1342 = vmatprep.subr.bf16.mxu0 %v3612_v27  ;;  %1514 = vmatprep.subr.bf16.mxu1 %v3615_v28  ;;  %v47_v27 = vpack.c.bf16 %v40_v26, %v33_v25  ;;  %v3694_v28 = vld [vmem:[%s5109_s3] ss:$16 sps:$4 sm:$0xff]   ;;  %v3787_v25 = vld [vmem:[%s5109_s3 + $0x1e8] ss:$16 sps:$4 sm:$0xff]   ;;  %v3792_v26 = vld [vmem:[%s5109_s3 + $0x204] ss:$16 sps:$4 sm:$0xff]  }
  0x8f   :  { %1343 = vmatpush1.bf16.msra.mxu0 %v3610_v29  ;;  %1515 = vmatpush1.bf16.msra.mxu1 %v3613_v30  ;;  %v3697_v29 = vld [vmem:[%s5109_s3 + $0x8] ss:$16 sps:$4 sm:$0xff]   ;;  %v3702_v30 = vld [vmem:[%s5109_s3 + $0x24] ss:$16 sps:$4 sm:$0xff]  }
  0x90   :  { %1344 = vmatprep.subr.bf16.mxu0 %v3618_v31  ;;  %1516 = vmatprep.subr.bf16.mxu1 %v3621_v32  ;;  %v3705_v31 = vld [vmem:[%s5109_s3 + $0x2c] ss:$16 sps:$4 sm:$0xff]   ;;  %v3700_v32 = vld [vmem:[%s5109_s3 + $0x20] ss:$16 sps:$4 sm:$0xff]  }
  0x93   :  { %1345 = vmatpush1.bf16.msra.mxu0 %v3616_v33  ;;  %1517 = vmatpush1.bf16.msra.mxu1 %v3619_v34  ;;  %v3703_v33 = vld [vmem:[%s5109_s3 + $0x28] ss:$16 sps:$4 sm:$0xff]   ;;  %v3708_v34 = vld [vmem:[%s5109_s3 + $0x44] ss:$16 sps:$4 sm:$0xff]  }
  0x94   :  { %1346 = vmatprep.subr.bf16.mxu0 %v3624_v35  ;;  %1518 = vmatprep.subr.bf16.mxu1 %v3627_v36  ;;  %v3711_v35 = vld [vmem:[%s5109_s3 + $0x4c] ss:$16 sps:$4 sm:$0xff]   ;;  %v3706_v36 = vld [vmem:[%s5109_s3 + $0x40] ss:$16 sps:$4 sm:$0xff]  }
  0x97   :  { %1347 = vmatpush1.bf16.msra.mxu0 %v3622_v37  ;;  %1519 = vmatpush1.bf16.msra.mxu1 %v3625_v38  ;;  %v3709_v37 = vld [vmem:[%s5109_s3 + $0x48] ss:$16 sps:$4 sm:$0xff]   ;;  %v3714_v38 = vld [vmem:[%s5109_s3 + $0x64] ss:$16 sps:$4 sm:$0xff]  }
  0x98   :  { %1348 = vmatprep.subr.bf16.mxu0 %v3630_v39  ;;  %1520 = vmatprep.subr.bf16.mxu1 %v3633_v40  ;;  %v3717_v39 = vld [vmem:[%s5109_s3 + $0x6c] ss:$16 sps:$4 sm:$0xff]   ;;  %v3712_v40 = vld [vmem:[%s5109_s3 + $0x60] ss:$16 sps:$4 sm:$0xff]  }
  0x9b   :  { %1349 = vmatpush1.bf16.msra.mxu0 %v3628_v41  ;;  %1521 = vmatpush1.bf16.msra.mxu1 %v3631_v42  ;;  %v3715_v41 = vld [vmem:[%s5109_s3 + $0x68] ss:$16 sps:$4 sm:$0xff]   ;;  %v3720_v42 = vld [vmem:[%s5109_s3 + $0x84] ss:$16 sps:$4 sm:$0xff]  }
  0x9c   :  { %1350 = vmatprep.subr.bf16.mxu0 %v3636_v43  ;;  %1522 = vmatprep.subr.bf16.mxu1 %v3639_v44  ;;  %v3723_v43 = vld [vmem:[%s5109_s3 + $0x8c] ss:$16 sps:$4 sm:$0xff]   ;;  %v3718_v44 = vld [vmem:[%s5109_s3 + $0x80] ss:$16 sps:$4 sm:$0xff]  }
  0x9f   :  { %1351 = vmatpush1.bf16.msra.mxu0 %v3634_v45  ;;  %1523 = vmatpush1.bf16.msra.mxu1 %v3637_v46  ;;  %v3721_v45 = vld [vmem:[%s5109_s3 + $0x88] ss:$16 sps:$4 sm:$0xff]   ;;  %v3726_v46 = vld [vmem:[%s5109_s3 + $0xa4] ss:$16 sps:$4 sm:$0xff]  }
  0xa0   :  { %1352 = vmatprep.subr.bf16.mxu0 %v3642_v47  ;;  %1524 = vmatprep.subr.bf16.mxu1 %v3645_v48  ;;  %v3729_v47 = vld [vmem:[%s5109_s3 + $0xac] ss:$16 sps:$4 sm:$0xff]   ;;  %v3724_v48 = vld [vmem:[%s5109_s3 + $0xa0] ss:$16 sps:$4 sm:$0xff]  }
  0xa3   :  { %1353 = vmatpush1.bf16.msra.mxu0 %v3640_v49  ;;  %1525 = vmatpush1.bf16.msra.mxu1 %v3643_v50  ;;  %v3727_v49 = vld [vmem:[%s5109_s3 + $0xa8] ss:$16 sps:$4 sm:$0xff]   ;;  %v3732_v50 = vld [vmem:[%s5109_s3 + $0xc4] ss:$16 sps:$4 sm:$0xff]  }
  0xa4   :  { %1354 = vmatprep.subr.bf16.mxu0 %v3648_v51  ;;  %1526 = vmatprep.subr.bf16.mxu1 %v3651_v52  ;;  %v3735_v51 = vld [vmem:[%s5109_s3 + $0xcc] ss:$16 sps:$4 sm:$0xff]   ;;  %v3730_v52 = vld [vmem:[%s5109_s3 + $0xc0] ss:$16 sps:$4 sm:$0xff]  }
  0xa7   :  { %1355 = vmatpush1.bf16.msra.mxu0 %v3646_v53  ;;  %1527 = vmatpush1.bf16.msra.mxu1 %v3649_v54  ;;  %v3733_v53 = vld [vmem:[%s5109_s3 + $0xc8] ss:$16 sps:$4 sm:$0xff]   ;;  %v3738_v54 = vld [vmem:[%s5109_s3 + $0xe4] ss:$16 sps:$4 sm:$0xff]  }
  0xa8   :  { %1356 = vmatprep.subr.bf16.mxu0 %v3654_v55  ;;  %1528 = vmatprep.subr.bf16.mxu1 %v3657_v56  ;;  %v3741_v55 = vld [vmem:[%s5109_s3 + $0xec] ss:$16 sps:$4 sm:$0xff]   ;;  %v3736_v56 = vld [vmem:[%s5109_s3 + $0xe0] ss:$16 sps:$4 sm:$0xff]  }
  0xab   :  { %1357 = vmatpush1.bf16.msra.mxu0 %v3652_v57  ;;  %1529 = vmatpush1.bf16.msra.mxu1 %v3655_v58  ;;  %v3739_v57 = vld [vmem:[%s5109_s3 + $0xe8] ss:$16 sps:$4 sm:$0xff]   ;;  %v3744_v58 = vld [vmem:[%s5109_s3 + $0x104] ss:$16 sps:$4 sm:$0xff]  }
  0xac   :  { %1358 = vmatprep.subr.bf16.mxu0 %v3660_v59  ;;  %1530 = vmatprep.subr.bf16.mxu1 %v3663_v60  ;;  %v3747_v59 = vld [vmem:[%s5109_s3 + $0x10c] ss:$16 sps:$4 sm:$0xff]   ;;  %v3742_v60 = vld [vmem:[%s5109_s3 + $0x100] ss:$16 sps:$4 sm:$0xff]  }
  0xaf   :  { %1359 = vmatpush1.bf16.msra.mxu0 %v3658_v61  ;;  %1531 = vmatpush1.bf16.msra.mxu1 %v3661_v62  ;;  %v3745_v61 = vld [vmem:[%s5109_s3 + $0x108] ss:$16 sps:$4 sm:$0xff]   ;;  %v3750_v62 = vld [vmem:[%s5109_s3 + $0x124] ss:$16 sps:$4 sm:$0xff]  }
  0xb0   :  { %1360 = vmatprep.subr.bf16.mxu0 %v3666_v63  ;;  %1532 = vmatprep.subr.bf16.mxu1 %v3669_v0  ;;  %v3753_v63 = vld [vmem:[%s5109_s3 + $0x12c] ss:$16 sps:$4 sm:$0xff]   ;;  %v3748_v0 = vld [vmem:[%s5109_s3 + $0x120] ss:$16 sps:$4 sm:$0xff]  }
  0xb3   :  { %1361 = vmatpush1.bf16.msra.mxu0 %v3664_v1  ;;  %1533 = vmatpush1.bf16.msra.mxu1 %v3667_v2  ;;  %v3751_v1 = vld [vmem:[%s5109_s3 + $0x128] ss:$16 sps:$4 sm:$0xff]   ;;  %v3756_v2 = vld [vmem:[%s5109_s3 + $0x144] ss:$16 sps:$4 sm:$0xff]  }
  0xb4   :  { %1362 = vmatprep.subr.bf16.mxu0 %v3672_v3  ;;  %1534 = vmatprep.subr.bf16.mxu1 %v3675_v4  ;;  %v3759_v3 = vld [vmem:[%s5109_s3 + $0x14c] ss:$16 sps:$4 sm:$0xff]   ;;  %v3754_v4 = vld [vmem:[%s5109_s3 + $0x140] ss:$16 sps:$4 sm:$0xff]  }
  0xb7   :  { %1363 = vmatpush1.bf16.msra.mxu0 %v3670_v5  ;;  %1535 = vmatpush1.bf16.msra.mxu1 %v3673_v6  ;;  %v3757_v5 = vld [vmem:[%s5109_s3 + $0x148] ss:$16 sps:$4 sm:$0xff]   ;;  %v3762_v6 = vld [vmem:[%s5109_s3 + $0x164] ss:$16 sps:$4 sm:$0xff]  }
  0xb8   :  { %1364 = vmatprep.subr.bf16.mxu0 %v3678_v7  ;;  %1536 = vmatprep.subr.bf16.mxu1 %v3681_v8  ;;  %v3765_v7 = vld [vmem:[%s5109_s3 + $0x16c] ss:$16 sps:$4 sm:$0xff]   ;;  %v3760_v8 = vld [vmem:[%s5109_s3 + $0x160] ss:$16 sps:$4 sm:$0xff]  }
  0xbb   :  { %1365 = vmatpush1.bf16.msra.mxu0 %v3676_v9  ;;  %1537 = vmatpush1.bf16.msra.mxu1 %v3679_v10  ;;  %v3763_v9 = vld [vmem:[%s5109_s3 + $0x168] ss:$16 sps:$4 sm:$0xff]   ;;  %v3768_v10 = vld [vmem:[%s5109_s3 + $0x184] ss:$16 sps:$4 sm:$0xff]  }
  0xbc   :  { %1366 = vmatprep.subr.bf16.mxu0 %v3684_v11  ;;  %1538 = vmatprep.subr.bf16.mxu1 %v3687_v12  ;;  %v3771_v11 = vld [vmem:[%s5109_s3 + $0x18c] ss:$16 sps:$4 sm:$0xff]   ;;  %v3766_v12 = vld [vmem:[%s5109_s3 + $0x180] ss:$16 sps:$4 sm:$0xff]  }
  0xbf   :  { %1367 = vmatpush1.bf16.msra.mxu0 %v3682_v13  ;;  %1539 = vmatpush1.bf16.msra.mxu1 %v3685_v14  ;;  %v3769_v13 = vld [vmem:[%s5109_s3 + $0x188] ss:$16 sps:$4 sm:$0xff]   ;;  %v3774_v14 = vld [vmem:[%s5109_s3 + $0x1a4] ss:$16 sps:$4 sm:$0xff]  }
  0xc0   :  { %1379 = vmatprep.subr.bf16.mxu0 %v3690_v17  ;;  %1551 = vmatprep.subr.bf16.mxu1 %v3693_v18  ;;  %v3775_v17 = vld [vmem:[%s5109_s3 + $0x1a8] ss:$16 sps:$4 sm:$0xff]   ;;  %v3780_v18 = vld [vmem:[%s5109_s3 + $0x1c4] ss:$16 sps:$4 sm:$0xff]  }
  0xc2   :  { %1369 = vmatmul.mubr.bf16.vlgmr.msra.gmra.mrb[0].mxu0 %v45_v21  ;;  %1541 = vmatmul.mubr.bf16.vlgmr.msra.gmra.mrb[0].mxu1 %v45_v21  ;;  %v3781_v21 = vld [vmem:[%s5109_s3 + $0x1c8] ss:$16 sps:$4 sm:$0xff]  }
  0xc3   :  { %1380 = vmatpush1.bf16.msra.mxu0 %v3688_v19  ;;  %1552 = vmatpush1.bf16.msra.mxu1 %v3691_v20  ;;  %v3783_v19 = vld [vmem:[%s5109_s3 + $0x1cc] ss:$16 sps:$4 sm:$0xff]   ;;  %v3778_v20 = vld [vmem:[%s5109_s3 + $0x1c0] ss:$16 sps:$4 sm:$0xff]  }
  0xc4   :  { %1411 = vmatprep.mubr.bf16.mxu0 %v3918_v24  ;;  %1583 = vmatprep.mubr.bf16.mxu1 %v3918_v24  ;;  %v3784_v24 = vld [vmem:[%s5109_s3 + $0x1e0] ss:$16 sps:$4 sm:$0xff]  }
  0xc5   :  { %2396 = vmatprep.subr.bf16.mxu0 %v3696_v22  ;;  %2482 = vmatprep.subr.bf16.mxu1 %v3699_v23  ;;  %v3786_v22 = vld [vmem:[%s5109_s3 + $0x1e4] ss:$16 sps:$4 sm:$0xff]   ;;  %v3789_v23 = vld [vmem:[%s5109_s3 + $0x1ec] ss:$16 sps:$4 sm:$0xff]  }
  0xce   :  { %3135 = vmatmul.mubr.msk.bf16.vlgmr.msra.gmra.mrb[0].mxu0 %vm1246_vm0, %v47_v27  ;;  %3136 = vmatmul.mubr.msk.bf16.vlgmr.msra.gmra.mrb[0].mxu1 %vm1246_vm0, %v47_v27  ;;  %v3795_v27 = vld [vmem:[%s5109_s3 + $0x20c] ss:$16 sps:$4 sm:$0xff]  }
  0xcf   :  { %2397 = vmatpush1.bf16.msra.mxu0 %v3694_v28  ;;  %2483 = vmatpush1.bf16.msra.mxu1 %v3697_v29  ;;  %v246_v28 = vlaneseq }
  0xd0   :  { %2398 = vmatprep.subr.bf16.mxu0 %v3702_v30  ;;  %2484 = vmatprep.subr.bf16.mxu1 %v3705_v31 }
  0xd1   :  { %v4787_v29 = vshrl.u32 %v246_v28, 7  ;;  %v3829_v28 = vld [vmem:[%s5109_s3 + $0x2c8] ss:$16 sps:$4 sm:$0xff]  }
  0xd3   :  { %2399 = vmatpush1.bf16.msra.mxu0 %v3700_v32  ;;  %2485 = vmatpush1.bf16.msra.mxu1 %v3703_v33  ;;  %v248_v30 = vsub.s32 0, %v4787_v29  ;;  %v256_v31 = vsub.s32 2, %v4787_v29  ;;  %v244_v32 = vld [vmem:[%s5111_s2] sm:$0xf]  ;;  %v252_v33 = vsub.s32 1, %v4787_v29 }
  0xd4   :  { %2400 = vmatprep.subr.bf16.mxu0 %v3708_v34  ;;  %2486 = vmatprep.subr.bf16.mxu1 %v3711_v35  ;;  %v260_v34 = vsub.s32 3, %v4787_v29 }
  0xd5   :  { %v249_v35 = vrot.slane %v244_v32, %v248_v30 }
  0xd7   :  { %2401 = vmatpush1.bf16.msra.mxu0 %v3706_v36  ;;  %2487 = vmatpush1.bf16.msra.mxu1 %v3709_v37  ;;  %v257_v36 = vrot.slane %v244_v32, %v256_v31  ;;  %v253_v37 = vrot.slane %v244_v32, %v252_v33 }
  0xd8   :  { %2402 = vmatprep.subr.bf16.mxu0 %v3714_v38  ;;  %2488 = vmatprep.subr.bf16.mxu1 %v3717_v39  ;;  %v261_v38 = vrot.slane %v244_v32, %v260_v34  ;;  %v3834_v32 = vld [vmem:[%s5109_s3 + $0x2e4] ss:$16 sps:$4 sm:$0xff]  }
  0xdb   :  { %2403 = vmatpush1.bf16.msra.mxu0 %v3712_v40  ;;  %2489 = vmatpush1.bf16.msra.mxu1 %v3715_v41 }
  0xdc   :  { %2404 = vmatprep.subr.bf16.mxu0 %v3720_v42  ;;  %2490 = vmatprep.subr.bf16.mxu1 %v3723_v43 }
  0xdf   :  { %2405 = vmatpush1.bf16.msra.mxu0 %v3718_v44  ;;  %2491 = vmatpush1.bf16.msra.mxu1 %v3721_v45 }
  0xe0   :  { %2406 = vmatprep.subr.bf16.mxu0 %v3726_v46  ;;  %2492 = vmatprep.subr.bf16.mxu1 %v3729_v47 }
  0xe3   :  { %2407 = vmatpush1.bf16.msra.mxu0 %v3724_v48  ;;  %2493 = vmatpush1.bf16.msra.mxu1 %v3727_v49 }
  0xe4   :  { %2408 = vmatprep.subr.bf16.mxu0 %v3732_v50  ;;  %2494 = vmatprep.subr.bf16.mxu1 %v3735_v51 }
  0xe7   :  { %2409 = vmatpush1.bf16.msra.mxu0 %v3730_v52  ;;  %2495 = vmatpush1.bf16.msra.mxu1 %v3733_v53 }
  0xe8   :  { %2410 = vmatprep.subr.bf16.mxu0 %v3738_v54  ;;  %2496 = vmatprep.subr.bf16.mxu1 %v3741_v55 }
  0xeb   :  { %2411 = vmatpush1.bf16.msra.mxu0 %v3736_v56  ;;  %2497 = vmatpush1.bf16.msra.mxu1 %v3739_v57 }
  0xec   :  { %2412 = vmatprep.subr.bf16.mxu0 %v3744_v58  ;;  %2498 = vmatprep.subr.bf16.mxu1 %v3747_v59 }
  0xef   :  { %2413 = vmatpush1.bf16.msra.mxu0 %v3742_v60  ;;  %2499 = vmatpush1.bf16.msra.mxu1 %v3745_v61 }
  0xf0   :  { %2414 = vmatprep.subr.bf16.mxu0 %v3750_v62  ;;  %2500 = vmatprep.subr.bf16.mxu1 %v3753_v63 }
  0xf3   :  { %2415 = vmatpush1.bf16.msra.mxu0 %v3748_v0  ;;  %2501 = vmatpush1.bf16.msra.mxu1 %v3751_v1 }
  0xf4   :  { %2416 = vmatprep.subr.bf16.mxu0 %v3756_v2  ;;  %2502 = vmatprep.subr.bf16.mxu1 %v3759_v3  ;;  %v3790_v3 = vld [vmem:[%s5109_s3 + $0x200] ss:$16 sps:$4 sm:$0xff]  }
  0xf7   :  { %2417 = vmatpush1.bf16.msra.mxu0 %v3754_v4  ;;  %2503 = vmatpush1.bf16.msra.mxu1 %v3757_v5  ;;  %v3793_v4 = vld [vmem:[%s5109_s3 + $0x208] ss:$16 sps:$4 sm:$0xff]   ;;  %v3798_v5 = vld [vmem:[%s5109_s3 + $0x224] ss:$16 sps:$4 sm:$0xff]  }
  0xf8   :  { %2418 = vmatprep.subr.bf16.mxu0 %v3762_v6  ;;  %2504 = vmatprep.subr.bf16.mxu1 %v3765_v7  ;;  %v3801_v6 = vld [vmem:[%s5109_s3 + $0x22c] ss:$16 sps:$4 sm:$0xff]   ;;  %v3796_v7 = vld [vmem:[%s5109_s3 + $0x220] ss:$16 sps:$4 sm:$0xff]  }
  0xfb   :  { %2419 = vmatpush1.bf16.msra.mxu0 %v3760_v8  ;;  %2505 = vmatpush1.bf16.msra.mxu1 %v3763_v9  ;;  %v3799_v8 = vld [vmem:[%s5109_s3 + $0x228] ss:$16 sps:$4 sm:$0xff]   ;;  %v3804_v9 = vld [vmem:[%s5109_s3 + $0x244] ss:$16 sps:$4 sm:$0xff]  }
  0xfc   :  { %2420 = vmatprep.subr.bf16.mxu0 %v3768_v10  ;;  %2506 = vmatprep.subr.bf16.mxu1 %v3771_v11  ;;  %v3807_v10 = vld [vmem:[%s5109_s3 + $0x24c] ss:$16 sps:$4 sm:$0xff]   ;;  %v3802_v11 = vld [vmem:[%s5109_s3 + $0x240] ss:$16 sps:$4 sm:$0xff]  }
  0xff   :  { %2421 = vmatpush1.bf16.msra.mxu0 %v3766_v12  ;;  %2507 = vmatpush1.bf16.msra.mxu1 %v3769_v13  ;;  %v3805_v12 = vld [vmem:[%s5109_s3 + $0x248] ss:$16 sps:$4 sm:$0xff]   ;;  %v3810_v13 = vld [vmem:[%s5109_s3 + $0x264] ss:$16 sps:$4 sm:$0xff]  }
 0x100   :  { %2422 = vmatprep.subr.bf16.mxu0 %v3774_v14  ;;  %2508 = vmatprep.subr.bf16.mxu1 %v3777_v15  ;;  %v3813_v14 = vld [vmem:[%s5109_s3 + $0x26c] ss:$16 sps:$4 sm:$0xff]   ;;  %v3808_v15 = vld [vmem:[%s5109_s3 + $0x260] ss:$16 sps:$4 sm:$0xff]  }
 0x103   :  { %2423 = vmatpush1.bf16.msra.mxu0 %v3772_v16  ;;  %2509 = vmatpush1.bf16.msra.mxu1 %v3775_v17  ;;  %v3811_v16 = vld [vmem:[%s5109_s3 + $0x268] ss:$16 sps:$4 sm:$0xff]   ;;  %v3816_v17 = vld [vmem:[%s5109_s3 + $0x284] ss:$16 sps:$4 sm:$0xff]  }
 0x104   :  { %2424 = vmatprep.subr.bf16.mxu0 %v3780_v18  ;;  %2510 = vmatprep.subr.bf16.mxu1 %v3783_v19  ;;  %v3819_v18 = vld [vmem:[%s5109_s3 + $0x28c] ss:$16 sps:$4 sm:$0xff]   ;;  %v3814_v19 = vld [vmem:[%s5109_s3 + $0x280] ss:$16 sps:$4 sm:$0xff]  }
 0x107   :  { %2425 = vmatpush1.bf16.msra.mxu0 %v3778_v20  ;;  %2511 = vmatpush1.bf16.msra.mxu1 %v3781_v21  ;;  %v3817_v20 = vld [vmem:[%s5109_s3 + $0x288] ss:$16 sps:$4 sm:$0xff]   ;;  %v3822_v21 = vld [vmem:[%s5109_s3 + $0x2a4] ss:$16 sps:$4 sm:$0xff]  }
 0x108   :  { %2426 = vmatprep.subr.bf16.mxu0 %v3786_v22  ;;  %2512 = vmatprep.subr.bf16.mxu1 %v3789_v23  ;;  %v3825_v22 = vld [vmem:[%s5109_s3 + $0x2ac] ss:$16 sps:$4 sm:$0xff]   ;;  %v3820_v23 = vld [vmem:[%s5109_s3 + $0x2a0] ss:$16 sps:$4 sm:$0xff]  }
 0x10b   :  { %2427 = vmatpush1.bf16.msra.mxu0 %v3784_v24  ;;  %2513 = vmatpush1.bf16.msra.mxu1 %v3787_v25  ;;  %v3823_v24 = vld [vmem:[%s5109_s3 + $0x2a8] ss:$16 sps:$4 sm:$0xff]   ;;  %v3828_v25 = vld [vmem:[%s5109_s3 + $0x2c4] ss:$16 sps:$4 sm:$0xff]  }
 0x10c   :  { %2439 = vmatprep.subr.bf16.mxu0 %v3792_v26  ;;  %2525 = vmatprep.subr.bf16.mxu1 %v3795_v27  ;;  %v3831_v26 = vld [vmem:[%s5109_s3 + $0x2cc] ss:$16 sps:$4 sm:$0xff]   ;;  %v3826_v27 = vld [vmem:[%s5109_s3 + $0x2c0] ss:$16 sps:$4 sm:$0xff]  }
 0x1a1   :  { %v1413_v39 = vpop.f32.mrb[0].mxu0  ;;  %v1585_v40 = vpop.f32.mrb[0].mxu1 }
 0x1a2   :  { %v3351_v41 = vadd.f32 %v1413_v39, %v249_v35  ;;  %v3355_v42 = vadd.f32 %v1585_v40, %v257_v36  ;;  %v1415_v43 = vpop.f32.mrb[1].mxu0  ;;  %v1587_v44 = vpop.f32.mrb[1].mxu1  ;;  %v3843_v39 = vld [vmem:[%s5109_s3 + $0x30c] ss:$16 sps:$4 sm:$0xff]   ;;  %v3838_v40 = vld [vmem:[%s5109_s3 + $0x300] ss:$16 sps:$4 sm:$0xff]  }
 0x1a3   :  { %v3352_v45 = vadd.f32 %v1415_v43, %v253_v37  ;;  %v3356_v46 = vadd.f32 %v1587_v44, %v261_v38  ;;  %v1417_v47 = vpop.f32.mrb[2].mxu0  ;;  %v1589_v48 = vpop.f32.mrb[2].mxu1  ;;  %v3849_v43 = vld [vmem:[%s5109_s3 + $0x32c] ss:$16 sps:$4 sm:$0xff]   ;;  %v3844_v44 = vld [vmem:[%s5109_s3 + $0x320] ss:$16 sps:$4 sm:$0xff]  }
 0x1a4   :  { %v3353_v49 = vadd.f32 %v1417_v47, %v249_v35  ;;  %v3357_v50 = vadd.f32 %v1589_v48, %v257_v36  ;;  %v1419_v51 = vpop.f32.mrb[3].mxu0  ;;  %v1591_v52 = vpop.f32.mrb[3].mxu1  ;;  %v1594_v55 = vmax.f32 %v3351_v41, 0.0  ;;  %v1596_v56 = vmax.f32 %v3355_v42, 0.0  ;;  %v3837_v35 = vld [vmem:[%s5109_s3 + $0x2ec] ss:$16 sps:$4 sm:$0xff]  }
 0x1a5   :  { %v3354_v53 = vadd.f32 %v1419_v51, %v253_v37  ;;  %v3358_v54 = vadd.f32 %v1591_v52, %v261_v38  ;;  %v1595_v59 = vmax.f32 %v3352_v45, 0.0  ;;  %v1597_v60 = vmax.f32 %v3356_v46, 0.0  ;;  %v3832_v36 = vld [vmem:[%s5109_s3 + $0x2e0] ss:$16 sps:$4 sm:$0xff]   ;;  %v3835_v37 = vld [vmem:[%s5109_s3 + $0x2e8] ss:$16 sps:$4 sm:$0xff]  }
 0x1a6   :  { %v1598_v57 = vmax.f32 %v3353_v49, 0.0  ;;  %v1600_v58 = vmax.f32 %v3357_v50, 0.0  ;;  %v3840_v38 = vld [vmem:[%s5109_s3 + $0x304] ss:$16 sps:$4 sm:$0xff]   ;;  %v3841_v41 = vld [vmem:[%s5109_s3 + $0x308] ss:$16 sps:$4 sm:$0xff]  }
 0x1a7   :  { %v1599_v61 = vmax.f32 %v3354_v53, 0.0  ;;  %v1601_v62 = vmax.f32 %v3358_v54, 0.0  ;;  %v3846_v42 = vld [vmem:[%s5109_s3 + $0x324] ss:$16 sps:$4 sm:$0xff]   ;;  %v3847_v45 = vld [vmem:[%s5109_s3 + $0x328] ss:$16 sps:$4 sm:$0xff]  }
 0x1a8   :  { %v1602_v63 = vpack.c.bf16 %v1598_v57, %v1594_v55  ;;  %v4804_v0 = vpack.c.bf16 %v1600_v58, %v1596_v56  ;;  %v3852_v46 = vld [vmem:[%s5109_s3 + $0x344] ss:$16 sps:$4 sm:$0xff]   ;;  %v3855_v47 = vld [vmem:[%s5109_s3 + $0x34c] ss:$16 sps:$4 sm:$0xff]   ;;  %v3850_v48 = vld [vmem:[%s5109_s3 + $0x340] ss:$16 sps:$4 sm:$0xff]  }
 0x1a9   :  { %v1603_v1 = vpack.c.bf16 %v1599_v61, %v1595_v59  ;;  %v1605_v2 = vpack.c.bf16 %v1601_v62, %v1597_v60  ;;  %v3853_v49 = vld [vmem:[%s5109_s3 + $0x348] ss:$16 sps:$4 sm:$0xff]   ;;  %v3858_v50 = vld [vmem:[%s5109_s3 + $0x364] ss:$16 sps:$4 sm:$0xff]   ;;  %v3861_v51 = vld [vmem:[%s5109_s3 + $0x36c] ss:$16 sps:$4 sm:$0xff]  }
 0x1aa   :  { %v3856_v52 = vld [vmem:[%s5109_s3 + $0x360] ss:$16 sps:$4 sm:$0xff]   ;;  %v3859_v53 = vld [vmem:[%s5109_s3 + $0x368] ss:$16 sps:$4 sm:$0xff]   ;;  %v3864_v54 = vld [vmem:[%s5109_s3 + $0x384] ss:$16 sps:$4 sm:$0xff]  }
 0x1ab   :  { %2428 = vmatprep.mubr.bf16.mxu0 %v1603_v1  ;;  %2514 = vmatprep.mubr.bf16.mxu1 %v1603_v1  ;;  %v3867_v55 = vld [vmem:[%s5109_s3 + $0x38c] ss:$16 sps:$4 sm:$0xff]   ;;  %v3862_v56 = vld [vmem:[%s5109_s3 + $0x380] ss:$16 sps:$4 sm:$0xff]   ;;  %v3865_v57 = vld [vmem:[%s5109_s3 + $0x388] ss:$16 sps:$4 sm:$0xff]  }
 0x1ac   :  { %2429 = vmatmul.mubr.bf16.vlgmr.msra.gmra.mrb[4].mxu0 %v1602_v63  ;;  %2515 = vmatmul.mubr.bf16.vlgmr.msra.gmra.mrb[4].mxu1 %v1602_v63  ;;  %v3870_v58 = vld [vmem:[%s5109_s3 + $0x3a4] ss:$16 sps:$4 sm:$0xff]   ;;  %v3873_v59 = vld [vmem:[%s5109_s3 + $0x3ac] ss:$16 sps:$4 sm:$0xff]   ;;  %v3868_v60 = vld [vmem:[%s5109_s3 + $0x3a0] ss:$16 sps:$4 sm:$0xff]  }
 0x1ad   :  { %2440 = vmatpush1.bf16.msra.mxu0 %v3790_v3  ;;  %2526 = vmatpush1.bf16.msra.mxu1 %v3793_v4  ;;  %v3871_v61 = vld [vmem:[%s5109_s3 + $0x3a8] ss:$16 sps:$4 sm:$0xff]   ;;  %v3876_v62 = vld [vmem:[%s5109_s3 + $0x3c4] ss:$16 sps:$4 sm:$0xff]   ;;  %v3879_v63 = vld [vmem:[%s5109_s3 + $0x3cc] ss:$16 sps:$4 sm:$0xff]  }
 0x1ae   :  { %2471 = vmatprep.mubr.bf16.mxu0 %v1605_v2  ;;  %2557 = vmatprep.mubr.bf16.mxu1 %v1605_v2  ;;  %v3874_v1 = vld [vmem:[%s5109_s3 + $0x3c0] ss:$16 sps:$4 sm:$0xff]   ;;  %v3877_v2 = vld [vmem:[%s5109_s3 + $0x3c8] ss:$16 sps:$4 sm:$0xff]   ;;  %v3882_v3 = vld [vmem:[%s5109_s3 + $0x3e4] ss:$16 sps:$4 sm:$0xff]  }
 0x1af   :  { %2441 = vmatprep.subr.bf16.mxu0 %v3798_v5  ;;  %2527 = vmatprep.subr.bf16.mxu1 %v3801_v6  ;;  %v3885_v4 = vld [vmem:[%s5109_s3 + $0x3ec] ss:$16 sps:$4 sm:$0xff]   ;;  %v3880_v5 = vld [vmem:[%s5109_s3 + $0x3e0] ss:$16 sps:$4 sm:$0xff]   ;;  %v3883_v6 = vld [vmem:[%s5109_s3 + $0x3e8] ss:$16 sps:$4 sm:$0xff]  }
 0x1b1   :  { %2442 = vmatpush1.bf16.msra.mxu0 %v3796_v7  ;;  %2528 = vmatpush1.bf16.msra.mxu1 %v3799_v8  ;;  %v3886_v7 = vld [vmem:[%s5110_s5 + $0x40] sm:$0xff]  }
 0x1b2   :  { %2443 = vmatprep.subr.bf16.mxu0 %v3804_v9  ;;  %2529 = vmatprep.subr.bf16.mxu1 %v3807_v10  ;;  %v3887_v8 = vld [vmem:[%s5110_s5 + $0xc0] sm:$0xff]  }
 0x1b3   :  { %v3888_v9 = vld [vmem:[%s5110_s5] sm:$0xff]  }
 0x1b4   :  { %v3889_v10 = vld [vmem:[%s5110_s5 + $0x80] sm:$0xff]  }
 0x1b5   :  { %2444 = vmatpush1.bf16.msra.mxu0 %v3802_v11  ;;  %2530 = vmatpush1.bf16.msra.mxu1 %v3805_v12  ;;  %v3890_v11 = vld [vmem:[%s5110_s5 + $0x48] sm:$0xff]  }
 0x1b6   :  { %2445 = vmatprep.subr.bf16.mxu0 %v3810_v13  ;;  %2531 = vmatprep.subr.bf16.mxu1 %v3813_v14  ;;  %v3891_v12 = vld [vmem:[%s5110_s5 + $0xc8] sm:$0xff]  }
 0x1b7   :  { %v3892_v13 = vld [vmem:[%s5110_s5 + $0x8] sm:$0xff]  }
 0x1b8   :  { %v3893_v14 = vld [vmem:[%s5110_s5 + $0x88] sm:$0xff]  }
 0x1b9   :  { %2446 = vmatpush1.bf16.msra.mxu0 %v3808_v15  ;;  %2532 = vmatpush1.bf16.msra.mxu1 %v3811_v16  ;;  %v3894_v15 = vld [vmem:[%s5110_s5 + $0x50] sm:$0xff]  }
 0x1ba   :  { %2447 = vmatprep.subr.bf16.mxu0 %v3816_v17  ;;  %2533 = vmatprep.subr.bf16.mxu1 %v3819_v18  ;;  %v3896_v16 = vld [vmem:[%s5110_s5 + $0x10] sm:$0xff]   ;;  %v3898_v18 = vld [vmem:[%s5110_s5 + $0x58] sm:$0xff]  }
 0x1bb   :  { %v3897_v17 = vld [vmem:[%s5110_s5 + $0x90] sm:$0xff]  }
 0x1bd   :  { %2448 = vmatpush1.bf16.msra.mxu0 %v3814_v19  ;;  %2534 = vmatpush1.bf16.msra.mxu1 %v3817_v20  ;;  %v3899_v19 = vld [vmem:[%s5110_s5 + $0xd8] sm:$0xff]  }
 0x1be   :  { %2449 = vmatprep.subr.bf16.mxu0 %v3822_v21  ;;  %2535 = vmatprep.subr.bf16.mxu1 %v3825_v22  ;;  %v3900_v20 = vld [vmem:[%s5110_s5 + $0x18] sm:$0xff]   ;;  %v3902_v22 = vld [vmem:[%s5110_s5 + $0x60] sm:$0xff]  }
 0x1bf   :  { %v3901_v21 = vld [vmem:[%s5110_s5 + $0x98] sm:$0xff]  }
 0x1c1   :  { %2450 = vmatpush1.bf16.msra.mxu0 %v3820_v23  ;;  %2536 = vmatpush1.bf16.msra.mxu1 %v3823_v24  ;;  %v3903_v23 = vld [vmem:[%s5110_s5 + $0xe0] sm:$0xff]  }
 0x1c2   :  { %2451 = vmatprep.subr.bf16.mxu0 %v3828_v25  ;;  %2537 = vmatprep.subr.bf16.mxu1 %v3831_v26  ;;  %v3904_v24 = vld [vmem:[%s5110_s5 + $0x20] sm:$0xff]   ;;  %v3906_v26 = vld [vmem:[%s5110_s5 + $0x68] sm:$0xff]  }
 0x1c3   :  { %v3905_v25 = vld [vmem:[%s5110_s5 + $0xa0] sm:$0xff]  }
 0x1c5   :  { %2452 = vmatpush1.bf16.msra.mxu0 %v3826_v27  ;;  %2538 = vmatpush1.bf16.msra.mxu1 %v3829_v28  ;;  %v3907_v27 = vld [vmem:[%s5110_s5 + $0xe8] sm:$0xff]  }
 0x1c6   :  { %2453 = vmatprep.subr.bf16.mxu0 %v3834_v32  ;;  %2539 = vmatprep.subr.bf16.mxu1 %v3837_v35  ;;  %v3908_v28 = vld [vmem:[%s5110_s5 + $0x28] sm:$0xff]   ;;  %v3910_v35 = vld [vmem:[%s5110_s5 + $0x70] sm:$0xff]  }
 0x1c7   :  { %v3909_v32 = vld [vmem:[%s5110_s5 + $0xa8] sm:$0xff]  }
 0x1c9   :  { %2454 = vmatpush1.bf16.msra.mxu0 %v3832_v36  ;;  %2540 = vmatpush1.bf16.msra.mxu1 %v3835_v37  ;;  %v3911_v36 = vld [vmem:[%s5110_s5 + $0xf0] sm:$0xff]  }
 0x1ca   :  { %2455 = vmatprep.subr.bf16.mxu0 %v3840_v38  ;;  %2541 = vmatprep.subr.bf16.mxu1 %v3843_v39  ;;  %v3912_v37 = vld [vmem:[%s5110_s5 + $0x30] sm:$0xff]   ;;  %v3914_v39 = vld [vmem:[%s5110_s5 + $0x78] sm:$0xff]  }
 0x1cb   :  { %v3913_v38 = vld [vmem:[%s5110_s5 + $0xb0] sm:$0xff]  }
 0x1cd   :  { %2456 = vmatpush1.bf16.msra.mxu0 %v3838_v40  ;;  %2542 = vmatpush1.bf16.msra.mxu1 %v3841_v41  ;;  %v3915_v40 = vld [vmem:[%s5110_s5 + $0xf8] sm:$0xff]  }
 0x1ce   :  { %2457 = vmatprep.subr.bf16.mxu0 %v3846_v42  ;;  %2543 = vmatprep.subr.bf16.mxu1 %v3849_v43  ;;  %v3916_v41 = vld [vmem:[%s5110_s5 + $0x38] sm:$0xff]   ;;  %v1734_v43 = vld [vmem:[%s5112_s4] sm:$0xf] }
 0x1cf   :  { %v3917_v42 = vld [vmem:[%s5110_s5 + $0xb8] sm:$0xff]  }
 0x1d1   :  { %2458 = vmatpush1.bf16.msra.mxu0 %v3844_v44  ;;  %2544 = vmatpush1.bf16.msra.mxu1 %v3847_v45  ;;  %v1739_v44 = vrot.slane %v1734_v43, %v248_v30  ;;  %v1747_v45 = vrot.slane %v1734_v43, %v256_v31 }
 0x1d2   :  { %2459 = vmatprep.subr.bf16.mxu0 %v3852_v46  ;;  %2545 = vmatprep.subr.bf16.mxu1 %v3855_v47  ;;  %v1743_v46 = vrot.slane %v1734_v43, %v252_v33  ;;  %v1751_v47 = vrot.slane %v1734_v43, %v260_v34 }
 0x1d5   :  { %2460 = vmatpush1.bf16.msra.mxu0 %v3850_v48  ;;  %2546 = vmatpush1.bf16.msra.mxu1 %v3853_v49 }
 0x1d6   :  { %2461 = vmatprep.subr.bf16.mxu0 %v3858_v50  ;;  %2547 = vmatprep.subr.bf16.mxu1 %v3861_v51 }
 0x1d9   :  { %2462 = vmatpush1.bf16.msra.mxu0 %v3856_v52  ;;  %2548 = vmatpush1.bf16.msra.mxu1 %v3859_v53 }
 0x1da   :  { %2463 = vmatprep.subr.bf16.mxu0 %v3864_v54  ;;  %2549 = vmatprep.subr.bf16.mxu1 %v3867_v55 }
 0x1dd   :  { %2464 = vmatpush1.bf16.msra.mxu0 %v3862_v56  ;;  %2550 = vmatpush1.bf16.msra.mxu1 %v3865_v57 }
 0x1de   :  { %2465 = vmatprep.subr.bf16.mxu0 %v3870_v58  ;;  %2551 = vmatprep.subr.bf16.mxu1 %v3873_v59 }
 0x1e1   :  { %2466 = vmatpush1.bf16.msra.mxu0 %v3868_v60  ;;  %2552 = vmatpush1.bf16.msra.mxu1 %v3871_v61 }
 0x1e2   :  { %2467 = vmatprep.subr.bf16.mxu0 %v3876_v62  ;;  %2553 = vmatprep.subr.bf16.mxu1 %v3879_v63 }
 0x1e5   :  { %2468 = vmatpush1.bf16.msra.mxu0 %v3874_v1  ;;  %2554 = vmatpush1.bf16.msra.mxu1 %v3877_v2 }
 0x1e6   :  { %2469 = vmatprep.subr.bf16.mxu0 %v3882_v3  ;;  %2555 = vmatprep.subr.bf16.mxu1 %v3885_v4 }
 0x1e9   :  { %2470 = vmatpush1.bf16.msra.mxu0 %v3880_v5  ;;  %2556 = vmatpush1.bf16.msra.mxu1 %v3883_v6 }
 0x1ea   :  { %3307 = vmatprep.subr.bf16.mxu0 %v3886_v7  ;;  %3329 = vmatprep.subr.bf16.mxu1 %v3887_v8 }
 0x1ec   :  { %2472 = vmatmul.mubr.bf16.vlgmr.msra.gmra.mrb[4].mxu0 %v4804_v0  ;;  %2558 = vmatmul.mubr.bf16.vlgmr.msra.gmra.mrb[4].mxu1 %v4804_v0  ;;  %v3895_v0 = vld [vmem:[%s5110_s5 + $0xd0] sm:$0xff]  }
 0x1ed   :  { %3308 = vmatpush3.bf16.msra.mxu0 %v3888_v9  ;;  %3330 = vmatpush3.bf16.msra.mxu1 %v3889_v10  ;;  %v3265_v10 = vld [vmem:[%s5113_s6] ss:$0 sm:$0xff] }
 0x1ee   :  { %3309 = vmatprep.subr.bf16.mxu0 %v3890_v11  ;;  %3331 = vmatprep.subr.bf16.mxu1 %v3891_v12 }
 0x1f1   :  { %3310 = vmatpush3.bf16.msra.mxu0 %v3892_v13  ;;  %3332 = vmatpush3.bf16.msra.mxu1 %v3893_v14 }
 0x1f2   :  { %3311 = vmatprep.subr.bf16.mxu0 %v3894_v15  ;;  %3333 = vmatprep.subr.bf16.mxu1 %v3895_v0 }
 0x1f5   :  { %3312 = vmatpush3.bf16.msra.mxu0 %v3896_v16  ;;  %3334 = vmatpush3.bf16.msra.mxu1 %v3897_v17 }
 0x1f6   :  { %3313 = vmatprep.subr.bf16.mxu0 %v3898_v18  ;;  %3335 = vmatprep.subr.bf16.mxu1 %v3899_v19 }
 0x1f9   :  { %3314 = vmatpush3.bf16.msra.mxu0 %v3900_v20  ;;  %3336 = vmatpush3.bf16.msra.mxu1 %v3901_v21 }
 0x1fa   :  { %3315 = vmatprep.subr.bf16.mxu0 %v3902_v22  ;;  %3337 = vmatprep.subr.bf16.mxu1 %v3903_v23 }
 0x1fd   :  { %3316 = vmatpush3.bf16.msra.mxu0 %v3904_v24  ;;  %3338 = vmatpush3.bf16.msra.mxu1 %v3905_v25 }
 0x1fe   :  { %3317 = vmatprep.subr.bf16.mxu0 %v3906_v26  ;;  %3339 = vmatprep.subr.bf16.mxu1 %v3907_v27 }
 0x201   :  { %3318 = vmatpush3.bf16.msra.mxu0 %v3908_v28  ;;  %3340 = vmatpush3.bf16.msra.mxu1 %v3909_v32 }
 0x202   :  { %3319 = vmatprep.subr.bf16.mxu0 %v3910_v35  ;;  %3341 = vmatprep.subr.bf16.mxu1 %v3911_v36 }
 0x205   :  { %3320 = vmatpush3.bf16.msra.mxu0 %v3912_v37  ;;  %3342 = vmatpush3.bf16.msra.mxu1 %v3913_v38 }
 0x206   :  { %3321 = vmatprep.subr.bf16.mxu0 %v3914_v39  ;;  %3343 = vmatprep.subr.bf16.mxu1 %v3915_v40 }
 0x209   :  { %3322 = vmatpush3.bf16.msra.mxu0 %v3916_v41  ;;  %3344 = vmatpush3.bf16.msra.mxu1 %v3917_v42 }
 0x2bf   :  { %v2473_v48 = vpop.f32.mrb[4].mxu0  ;;  %v2559_v49 = vpop.f32.mrb[4].mxu1 }
 0x2c0   :  { %v3359_v50 = vadd.f32 %v2473_v48, %v1739_v44  ;;  %v3363_v51 = vadd.f32 %v2559_v49, %v1747_v45  ;;  %v2475_v52 = vpop.f32.mrb[5].mxu0  ;;  %v2561_v53 = vpop.f32.mrb[5].mxu1 }
 0x2c1   :  { %v3360_v54 = vadd.f32 %v2475_v52, %v1743_v46  ;;  %v3364_v55 = vadd.f32 %v2561_v53, %v1751_v47  ;;  %v2477_v56 = vpop.f32.mrb[6].mxu0  ;;  %v2563_v57 = vpop.f32.mrb[6].mxu1 }
 0x2c2   :  { %v3361_v30 = vadd.f32 %v2477_v56, %v1739_v44  ;;  %v3365_v58 = vadd.f32 %v2563_v57, %v1747_v45  ;;  %v2479_v59 = vpop.f32.mrb[7].mxu0  ;;  %v2565_v31 = vpop.f32.mrb[7].mxu1  ;;  %v2568_v33 = vmax.f32 %v3359_v50, 0.0  ;;  %v2570_v62 = vmax.f32 %v3363_v51, 0.0 }
 0x2c3   :  { %v3362_v60 = vadd.f32 %v2479_v59, %v1743_v46  ;;  %v3366_v61 = vadd.f32 %v2565_v31, %v1751_v47  ;;  %v2569_v63 = vmax.f32 %v3360_v54, 0.0  ;;  %v2571_v1 = vmax.f32 %v3364_v55, 0.0 }
 0x2c4   :  { %v2572_v29 = vmax.f32 %v3361_v30, 0.0  ;;  %v2574_v34 = vmax.f32 %v3365_v58, 0.0 }
 0x2c5   :  { %v2573_v2 = vmax.f32 %v3362_v60, 0.0  ;;  %v2575_v3 = vmax.f32 %v3366_v61, 0.0 }
 0x2c6   :  { %v2576_v4 = vpack.c.bf16 %v2572_v29, %v2568_v33  ;;  %v2578_v5 = vpack.c.bf16 %v2574_v34, %v2570_v62 }
 0x2c7   :  { %v2577_v6 = vpack.c.bf16 %v2573_v2, %v2569_v63  ;;  %v2579_v7 = vpack.c.bf16 %v2575_v3, %v2571_v1 }
 0x2c9   :  { %2875 = vmatprep.mubr.bf16.mxu0 %v2577_v6  ;;  %2916 = vmatprep.mubr.bf16.mxu1 %v2579_v7 }
 0x2ca   :  { %2876 = vmatmul.mubr.bf16.vlgmr.msra.gmra.mrb[8].mxu0 %v2576_v4  ;;  %2917 = vmatmul.mubr.bf16.vlgmr.msra.gmra.mrb[8].mxu1 %v2578_v5 }
 0x39d   :  { %v3323_v8 = vpop.f32.mrb[8].mxu0  ;;  %v3345_v9 = vpop.f32.mrb[8].mxu1 }
 0x39e   :  { %v3324_v11 = vpop.f32.mrb[9].mxu0  ;;  %v3346_v12 = vpop.f32.mrb[9].mxu1 }
 0x39f   :  { %v3325_v13 = vadd.f32 %v3324_v11, %v3323_v8  ;;  %v3347_v14 = vadd.f32 %v3346_v12, %v3345_v9  ;;  %v3326_v15 = vpop.f32.mrb[10].mxu0  ;;  %v3348_v0 = vpop.f32.mrb[10].mxu1 }
 0x3a0   :  { %v3327_v16 = vpop.f32.mrb[11].mxu0  ;;  %v3349_v17 = vpop.f32.mrb[11].mxu1 }
 0x3a1   :  { %v2878_v18 = vadd.f32 %v3325_v13, %v3265_v10  ;;  %v3328_v19 = vadd.f32 %v3327_v16, %v3326_v15  ;;  %v3350_v20 = vadd.f32 %v3349_v17, %v3348_v0 }
 0x3a3   :  { %v2919_v21 = vadd.f32 %v3347_v14, %v2878_v18  ;;  %v2881_v22 = vadd.f32 %v3328_v19, %v3265_v10 }
 0x3a5   :  { %v2922_v23 = vadd.f32 %v3350_v20, %v2881_v22 }
 0x3a7   :  { %v3305_v24 = vpack.c.bf16 %v2922_v23, %v2919_v21 }
 0x3a9   :  { %3306 = vst [vmem:[%s5114_s7] sm:$0xff] %v3305_v24  }

</bundles_post_ra>
